<compile_context>
chip_gen: v5e
topology: v5e:2x2
jax: 0.10.0
libtpu: 0.0.40
codegen_flags: <defaults>
</compile_context>

<pallas_src>
import math
import functools

import jax
import jax.numpy as jnp
from jax.experimental import pallas as pl
from jax.experimental.pallas import tpu as pltpu


# ----------------------------- kernels -------------------------------------

def _layer_norm(x, w, b, eps=1e-5):
    mean = jnp.mean(x, axis=-1, keepdims=True)
    var = jnp.mean((x - mean) ** 2, axis=-1, keepdims=True)
    return (x - mean) * jax.lax.rsqrt(var + eps) * w + b


def encoder_stack_kernel(x_ref, mask_ref,
                         wqkv_ref, bqkv_ref, wo_ref, bo_ref,
                         ln1w_ref, ln1b_ref, ln2w_ref, ln2b_ref,
                         ffw1_ref, ffb1_ref, ffw2_ref, ffb2_ref,
                         o_ref, h_sc, *, num_heads):
    """All encoder layers, whole batch per step. grid=(L,).

    The running activation (B, S, E) is carried across the layer axis in VMEM scratch
    `h_sc`; per-layer weight slabs are streamed exactly once (no B-factor). The HBM
    output block (constant block index) is only written on the last layer.
    """
    l = pl.program_id(0)

    @pl.when(l == 0)
    def _():
        h_sc[...] = x_ref[...]

    x = h_sc[...]                                  # (B, S, E) f32 residual stream
    B, S, E = x.shape
    NH = num_heads
    HD = E // NH

    x2d = x.reshape(B * S, E)
    xb = x2d.astype(jnp.bfloat16)

    # ---- fused QKV projection: one lane-dense (B*S, E) @ (E, 3E) MXU matmul.
    # 1/sqrt(HD) attention scale is pre-folded into the Q columns / Q bias.
    qkv = jnp.dot(xb, wqkv_ref[0], preferred_element_type=jnp.float32) + bqkv_ref[0]

    mask = mask_ref[...]                           # (S, S) f32, hoisted constant input

    # ---- per-head attention. Heads are static lane slices of the fused qkv slab;
    # scores / context use B-batched 3-D einsums (f32 softmax, bf16 MXU operands).
    # TODO(synk): for long sequences, tile the KV axis with a flash-style online
    # softmax instead of materializing full (B, S, S) scores per head (required to fit
    # v7x's 64 MiB VMEM at realistic S / NH).
    ctx_heads = []
    for h in range(NH):                            # static unroll over heads
        qh = qkv[:, h * HD:(h + 1) * HD].astype(jnp.bfloat16).reshape(B, S, HD)
        kh = qkv[:, E + h * HD:E + (h + 1) * HD].astype(jnp.bfloat16).reshape(B, S, HD)
        vh = qkv[:, 2 * E + h * HD:2 * E + (h + 1) * HD].astype(jnp.bfloat16).reshape(B, S, HD)
        s = jnp.einsum('bqd,bkd->bqk', qh, kh,
                       preferred_element_type=jnp.float32)          # (B, S, S) f32
        s = s + mask[None]
        s = s - jnp.max(s, axis=-1, keepdims=True)
        p = jnp.exp(s)
        p = p * pl.reciprocal(jnp.sum(p, axis=-1, keepdims=True), approx=True)
        ctx_heads.append(jnp.einsum('bqk,bkd->bqd', p.astype(jnp.bfloat16), vh,
                                    preferred_element_type=jnp.float32))
    ctx = jnp.concatenate(ctx_heads, axis=-1)      # (B, S, E): single head-merge relayout

    # ---- fused output projection: one full-K (B*S, E) @ (E, E) matmul.
    attn = jnp.dot(ctx.reshape(B * S, E).astype(jnp.bfloat16), wo_ref[0],
                   preferred_element_type=jnp.float32) + bo_ref[0]

    # Residual + post-LN 1 (f32).
    y1 = _layer_norm(x2d + attn, ln1w_ref[0], ln1b_ref[0])

    # Feed-forward (Linear -> ReLU -> Linear), pre-transposed bf16 weights.
    h1 = jnp.dot(y1.astype(jnp.bfloat16), ffw1_ref[0],
                 preferred_element_type=jnp.float32) + ffb1_ref[0]
    h1 = jnp.maximum(h1, 0.0)
    ff = jnp.dot(h1.astype(jnp.bfloat16), ffw2_ref[0],
                 preferred_element_type=jnp.float32) + ffb2_ref[0]
    y2 = _layer_norm(y1 + ff, ln2w_ref[0], ln2b_ref[0])

    h_sc[...] = y2.reshape(B, S, E)

    @pl.when(l == pl.num_programs(0) - 1)
    def _():
        o_ref[...] = y2.reshape(B, S, E).astype(o_ref.dtype)


def out_proj_kernel(x_ref, w_ref, b_ref, o_ref):
    """Vocabulary projection for one (vocab tile, batch element)."""
    o_ref[0] = jnp.dot(x_ref[0], w_ref[...],                  # bf16 @ bf16 -> f32
                       preferred_element_type=jnp.float32) + b_ref[...]


# ----------------------------- wrappers ------------------------------------

# Explicit VMEM ceiling. 64 MiB fits v5e/v6e (128 MiB physical) and equals v7x's
# physical VMEM; at realistic model sizes re-derive per generation (<= ~48-56 MiB on
# v7x, up to ~100 MiB on v5e/v6e).
_VMEM_LIMIT = 64 * 1024 * 1024


def run_encoder_stack(x, mask, packed, num_heads):
    B, S, E = x.shape
    L = packed["wqkv"].shape[0]

    def wspec(arr):
        tail = tuple(arr.shape[1:])
        nd = len(tail)
        return pl.BlockSpec((1,) + tail, lambda l, _nd=nd: (l,) + (0,) * _nd)

    names = ["wqkv", "bqkv", "wo", "bo",
             "ln1_w", "ln1_b", "ln2_w", "ln2_b",
             "ff_w1", "ff_b1", "ff_w2", "ff_b2"]

    in_specs = [pl.BlockSpec((B, S, E), lambda l: (0, 0, 0)),   # activations (resident)
                pl.BlockSpec((S, S), lambda l: (0, 0))]         # causal mask (resident)
    in_specs += [wspec(packed[n]) for n in names]
    out_spec = pl.BlockSpec((B, S, E), lambda l: (0, 0, 0))     # written at l == L-1

    kernel = functools.partial(encoder_stack_kernel, num_heads=num_heads)
    # TODO(synk): on v7x (2 TensorCores), add a parallel grid axis (e.g. over query
    # blocks) so both cores are used when B is small; grid=(L,) keeps weights
    # single-streamed but is single-core.
    return pl.pallas_call(
        kernel,
        out_shape=jax.ShapeDtypeStruct((B, S, E), jnp.bfloat16),
        grid=(L,),
        in_specs=in_specs,
        out_specs=out_spec,
        scratch_shapes=[pltpu.VMEM((B, S, E), jnp.float32)],    # residual stream
        compiler_params=pltpu.CompilerParams(
            dimension_semantics=("arbitrary",),
            vmem_limit_bytes=_VMEM_LIMIT),
    )(x, mask, *[packed[n] for n in names])


def _pick_vocab_tile(v_pad):
    # Lane-dense tiles (v_pad is a multiple of 128). Capped at 512 so double-buffered
    # (S, tv) f32 output + (E, tv) bf16 weight tiles stay within v7x's 64 MiB VMEM at
    # realistic S. TODO(synk): allow 1024-2048 on v6e/v5e (128 MiB VMEM).
    for tv in (512, 256, 128):
        if v_pad % tv == 0:
            return tv
    return v_pad


def run_output_projection(x_bf16, w_t, b, vocab_size):
    """x_bf16: (B,S,E) bf16, w_t: (E,V_pad) bf16 (pre-transposed, zero-padded),
    b: (1,V_pad) f32."""
    B, S, E = x_bf16.shape
    V_pad = w_t.shape[1]
    tv = _pick_vocab_tile(V_pad)
    logits = pl.pallas_call(
        out_proj_kernel,
        out_shape=jax.ShapeDtypeStruct((B, S, V_pad), jnp.float32),
        # Vocab tiles outer, batch inner: each (E, tv) weight tile is DMA'd once,
        # independent of B; only the small (S, E) activation is re-fetched.
        grid=(V_pad // tv, B),
        in_specs=[
            pl.BlockSpec((1, S, E), lambda j, b: (b, 0, 0)),
            pl.BlockSpec((E, tv), lambda j, b: (0, j)),
            pl.BlockSpec((1, tv), lambda j, b: (0, j)),
        ],
        out_specs=pl.BlockSpec((1, S, tv), lambda j, b: (b, 0, j)),
        compiler_params=pltpu.CompilerParams(
            dimension_semantics=("parallel", "parallel"),
            vmem_limit_bytes=_VMEM_LIMIT),
    )(x_bf16, w_t, b)
    return logits[..., :vocab_size]


def standard_transformer_forward(x_ids, packed, num_heads):
    """Full StandardTransformer.forward. x_ids: (B, S) int32 token ids."""
    B, S = x_ids.shape
    # Embedding gathers are glue (plain JAX); heavy math lives in the Pallas kernels.
    token_emb = jnp.take(packed["tok_emb"], x_ids, axis=0)           # (B, S, E)
    pos_emb = packed["pos_emb"][:S][None, :, :]                      # (1, S, E)
    h = (token_emb + pos_emb).astype(jnp.float32)                    # dropout == identity

    # Causal mask built once (hoisted out of the per-layer kernel body).
    row = jnp.arange(S)[:, None]
    col = jnp.arange(S)[None, :]
    mask = jnp.where(col > row, jnp.float32(-1e30), jnp.float32(0.0))

    h = run_encoder_stack(h, mask, packed, num_heads)                # (B, S, E) bf16
    logits = run_output_projection(h, packed["proj_w"], packed["proj_b"],
                                   packed["vocab_size"])
    return logits


# ----------------------------- params --------------------------------------

def init_params(key, vocab_size, seq_length, embed_dim, hidden_dim, num_layers):
    """PyTorch-convention parameters (out_features, in_features), f32."""
    std = 0.02
    keys = jax.random.split(key, 3 + 4 * num_layers)
    ki = iter(keys)

    def normal(shape):
        return (std * jax.random.normal(next(ki), shape)).astype(jnp.float32)

    params = {
        "tok_emb": normal((vocab_size, embed_dim)),
        "pos_emb": normal((seq_length, embed_dim)),
        "proj_w": normal((vocab_size, embed_dim)),
        "proj_b": jnp.zeros((vocab_size,), jnp.float32),
        "layers": [],
    }
    for _ in range(num_layers):
        params["layers"].append({
            "in_w": normal((3 * embed_dim, embed_dim)),
            "in_b": jnp.zeros((3 * embed_dim,), jnp.float32),
            "out_w": normal((embed_dim, embed_dim)),
            "out_b": jnp.zeros((embed_dim,), jnp.float32),
            "ln1_w": jnp.ones((embed_dim,), jnp.float32),
            "ln1_b": jnp.zeros((embed_dim,), jnp.float32),
            "ln2_w": jnp.ones((embed_dim,), jnp.float32),
            "ln2_b": jnp.zeros((embed_dim,), jnp.float32),
            "ff_w1": normal((hidden_dim, embed_dim)),
            "ff_b1": jnp.zeros((hidden_dim,), jnp.float32),
            "ff_w2": normal((embed_dim, hidden_dim)),
            "ff_b2": jnp.zeros((embed_dim,), jnp.float32),
        })
    return params


def pack_params(params, num_heads):
    """Wrapper-side prep: fuse/pre-transpose weights, fold the attention scale into Q,
    cast matmul weights to bf16, pad the vocab dim to a multiple of 128, and stack
    per-layer tensors with a leading layer dim for the (L,) grid."""
    E = params["tok_emb"].shape[1]
    NH = num_heads
    HD = E // NH
    scale = 1.0 / math.sqrt(HD)
    layers = params["layers"]

    def stack(fn):
        return jnp.stack([fn(lp) for lp in layers], axis=0)

    def fused_qkv_w(p):
        # PyTorch in_proj_weight rows are [q; k; v] out-features. Pre-transpose to
        # (E, 3E) columns [q | k | v]; fold the 1/sqrt(HD) scale into the Q columns.
        wq = p["in_w"][:E].T * scale
        wk = p["in_w"][E:2 * E].T
        wv = p["in_w"][2 * E:].T
        return jnp.concatenate([wq, wk, wv], axis=1).astype(jnp.bfloat16)  # (E, 3E)

    def fused_qkv_b(p):
        bq = p["in_b"][:E] * scale                 # scale folded into Q bias too
        bk = p["in_b"][E:2 * E]
        bv = p["in_b"][2 * E:]
        return jnp.concatenate([bq, bk, bv]).reshape(1, 3 * E).astype(jnp.float32)

    V = params["proj_w"].shape[0]
    V_pad = ((V + 127) // 128) * 128               # lane-dense vocab (no masked stores)
    proj_w_t = params["proj_w"].T.astype(jnp.bfloat16)                # (E, V)
    proj_w_t = jnp.pad(proj_w_t, ((0, 0), (0, V_pad - V)))
    proj_b = jnp.pad(params["proj_b"], (0, V_pad - V)).reshape(1, V_pad)

    packed = {
        "tok_emb": params["tok_emb"],
        "pos_emb": params["pos_emb"],
        "proj_w": proj_w_t,                        # (E, V_pad) bf16
        "proj_b": proj_b,                          # (1, V_pad) f32
        "vocab_size": V,
        # attention
        "wqkv": stack(fused_qkv_w),                # (L, E, 3E) bf16
        "bqkv": stack(fused_qkv_b),                # (L, 1, 3E) f32
        "wo": stack(lambda p: p["out_w"].T.astype(jnp.bfloat16)),     # (L, E, E)
        "bo": stack(lambda p: p["out_b"].reshape(1, E)),
        # layer norms
        "ln1_w": stack(lambda p: p["ln1_w"].reshape(1, E)),
        "ln1_b": stack(lambda p: p["ln1_b"].reshape(1, E)),
        "ln2_w": stack(lambda p: p["ln2_w"].reshape(1, E)),
        "ln2_b": stack(lambda p: p["ln2_b"].reshape(1, E)),
        # feed-forward
        "ff_w1": stack(lambda p: p["ff_w1"].T.astype(jnp.bfloat16)),  # (L, E, H)
        "ff_b1": stack(lambda p: p["ff_b1"].reshape(1, -1)),
        "ff_w2": stack(lambda p: p["ff_w2"].T.astype(jnp.bfloat16)),  # (L, H, E)
        "ff_b2": stack(lambda p: p["ff_b2"].reshape(1, E)),
    }
    return packed


# ----------------------------- main ----------------------------------------

if __name__ == "__main__":
    vocab_size = 64
    seq_length = 8
    embed_dim = 32
    num_heads = 4
    hidden_dim = 64
    num_layers = 2
    batch = 2

    assert embed_dim % num_heads == 0

    key = jax.random.PRNGKey(0)
    k_params, k_ids = jax.random.split(key)
    params = init_params(k_params, vocab_size, seq_length, embed_dim,
                         hidden_dim, num_layers)
    packed = pack_params(params, num_heads)
    x_ids = jax.random.randint(k_ids, (batch, seq_length), 0, vocab_size,
                               dtype=jnp.int32)

    logits = standard_transformer_forward(x_ids, packed, num_heads)
    logits = jax.block_until_ready(logits)
    assert logits.shape == (batch, seq_length, vocab_size)
    assert logits.dtype == jnp.float32
    assert bool(jnp.all(jnp.isfinite(logits)))
    print("KERNEL_OK")
</pallas_src>

<mosaic_0001>
module attributes {stable_mosaic.version = 11 : i64} {
  func.func @encoder_stack_kernel(%arg0: i32, %arg1: memref<2x8x32xf32, #tpu.memory_space<vmem>>, %arg2: memref<8x8xf32, #tpu.memory_space<vmem>>, %arg3: memref<1x32x96xbf16, #tpu.memory_space<vmem>>, %arg4: memref<1x1x96xf32, #tpu.memory_space<vmem>>, %arg5: memref<1x32x32xbf16, #tpu.memory_space<vmem>>, %arg6: memref<1x1x32xf32, #tpu.memory_space<vmem>>, %arg7: memref<1x1x32xf32, #tpu.memory_space<vmem>>, %arg8: memref<1x1x32xf32, #tpu.memory_space<vmem>>, %arg9: memref<1x1x32xf32, #tpu.memory_space<vmem>>, %arg10: memref<1x1x32xf32, #tpu.memory_space<vmem>>, %arg11: memref<1x32x64xbf16, #tpu.memory_space<vmem>>, %arg12: memref<1x1x64xf32, #tpu.memory_space<vmem>>, %arg13: memref<1x64x32xbf16, #tpu.memory_space<vmem>>, %arg14: memref<1x1x32xf32, #tpu.memory_space<vmem>>, %arg15: memref<2x8x32xbf16, #tpu.memory_space<vmem>>, %arg16: memref<2x8x32xf32, #tpu.memory_space<vmem>>) attributes {dimension_semantics = [#tpu.dimension_semantics<arbitrary>], iteration_bounds = array<i64: 2>, scalar_prefetch = 0 : i64, scratch_operands = 1 : i64, tpu.core_type = #tpu.core_type<tc>, window_params = [{pipeline_mode = #tpu.pipeline_mode<synchronous>, transform_indices = @transform_0, window_bounds = array<i64: 2, 8, 32>}, {pipeline_mode = #tpu.pipeline_mode<synchronous>, transform_indices = @transform_1, window_bounds = array<i64: 8, 8>}, {transform_indices = @transform_2, window_bounds = array<i64: 1, 32, 96>}, {transform_indices = @transform_3, window_bounds = array<i64: 1, 1, 96>}, {transform_indices = @transform_4, window_bounds = array<i64: 1, 32, 32>}, {transform_indices = @transform_5, window_bounds = array<i64: 1, 1, 32>}, {transform_indices = @transform_6, window_bounds = array<i64: 1, 1, 32>}, {transform_indices = @transform_7, window_bounds = array<i64: 1, 1, 32>}, {transform_indices = @transform_8, window_bounds = array<i64: 1, 1, 32>}, {transform_indices = @transform_9, window_bounds = array<i64: 1, 1, 32>}, {transform_indices = @transform_10, window_bounds = array<i64: 1, 32, 64>}, {transform_indices = @transform_11, window_bounds = array<i64: 1, 1, 64>}, {transform_indices = @transform_12, window_bounds = array<i64: 1, 64, 32>}, {transform_indices = @transform_13, window_bounds = array<i64: 1, 1, 32>}, {pipeline_mode = #tpu.pipeline_mode<synchronous>, transform_indices = @transform_14, window_bounds = array<i64: 2, 8, 32>}]} {
    %c0_i32 = arith.constant 0 : i32
    %0 = arith.cmpi eq, %arg0, %c0_i32 : i32
    %1 = arith.extui %0 : i1 to i32
    %c0_i32_0 = arith.constant 0 : i32
    %2 = arith.cmpi ne, %1, %c0_i32_0 : i32
    scf.if %2 {
      %c0_75 = arith.constant 0 : index
      %c0_76 = arith.constant 0 : index
      %c0_77 = arith.constant 0 : index
      %201 = vector.load %arg1[%c0_75, %c0_76, %c0_77] : memref<2x8x32xf32, #tpu.memory_space<vmem>>, vector<2x8x32xf32>
      %c0_78 = arith.constant 0 : index
      %c0_79 = arith.constant 0 : index
      %c0_80 = arith.constant 0 : index
      %202 = vector.load %arg16[%c0_78, %c0_79, %c0_80] : memref<2x8x32xf32, #tpu.memory_space<vmem>>, vector<2x8x32xf32>
      tpu.vector_store %arg16[%c0_78, %c0_79, %c0_80], %201 {strides = array<i32>} : memref<2x8x32xf32, #tpu.memory_space<vmem>>, vector<2x8x32xf32>,
    } else {
    }
    %c0 = arith.constant 0 : index
    %c0_1 = arith.constant 0 : index
    %c0_2 = arith.constant 0 : index
    %3 = vector.load %arg16[%c0, %c0_1, %c0_2] : memref<2x8x32xf32, #tpu.memory_space<vmem>>, vector<2x8x32xf32>
    %4 = vector.shape_cast %3 : vector<2x8x32xf32> to vector<16x32xf32>
    %5 = arith.truncf %4 : vector<16x32xf32> to vector<16x32xbf16>
    %c0_3 = arith.constant 0 : index
    %c0_4 = arith.constant 0 : index
    %c0_5 = arith.constant 0 : index
    %6 = vector.load %arg3[%c0_3, %c0_4, %c0_5] : memref<1x32x96xbf16, #tpu.memory_space<vmem>>, vector<1x32x96xbf16>
    %7 = vector.shape_cast %6 : vector<1x32x96xbf16> to vector<32x96xbf16>
    %cst = arith.constant dense<0.000000e+00> : vector<16x96xf32>
    %8 = tpu.matmul %5, %7, %cst {dimension_numbers = #tpu.dot_dimension_numbers<[1], [0], [0], [1], [0, 0, 1, 1], [], []>} : vector<16x32xbf16>, vector<32x96xbf16>, vector<16x96xf32> -> vector<16x96xf32>
    %c0_6 = arith.constant 0 : index
    %c0_7 = arith.constant 0 : index
    %c0_8 = arith.constant 0 : index
    %9 = vector.load %arg4[%c0_6, %c0_7, %c0_8] : memref<1x1x96xf32, #tpu.memory_space<vmem>>, vector<1x1x96xf32>
    %10 = vector.shape_cast %9 : vector<1x1x96xf32> to vector<1x96xf32>
    %11 = vector.broadcast %10 : vector<1x96xf32> to vector<16x96xf32>
    %12 = arith.addf %8, %11 : vector<16x96xf32>
    %c0_9 = arith.constant 0 : index
    %c0_10 = arith.constant 0 : index
    %13 = vector.load %arg2[%c0_9, %c0_10] : memref<8x8xf32, #tpu.memory_space<vmem>>, vector<8x8xf32>
    %14 = vector.extract_strided_slice %12 {offsets = [0, 0], sizes = [16, 8], strides = [1, 1]} : vector<16x96xf32> to vector<16x8xf32>
    %15 = arith.truncf %14 : vector<16x8xf32> to vector<16x8xbf16>
    %16 = vector.shape_cast %15 : vector<16x8xbf16> to vector<2x8x8xbf16>
    %17 = vector.extract_strided_slice %12 {offsets = [0, 32], sizes = [16, 8], strides = [1, 1]} : vector<16x96xf32> to vector<16x8xf32>
    %18 = arith.truncf %17 : vector<16x8xf32> to vector<16x8xbf16>
    %19 = vector.shape_cast %18 : vector<16x8xbf16> to vector<2x8x8xbf16>
    %20 = vector.extract_strided_slice %12 {offsets = [0, 64], sizes = [16, 8], strides = [1, 1]} : vector<16x96xf32> to vector<16x8xf32>
    %21 = arith.truncf %20 : vector<16x8xf32> to vector<16x8xbf16>
    %22 = vector.shape_cast %21 : vector<16x8xbf16> to vector<2x8x8xbf16>
    "tpu.trace_start"() <{level = 10 : i32, message = "bqd,bkd->bqk"}> : () -> ()
    %cst_11 = arith.constant dense<0.000000e+00> : vector<2x8x8xf32>
    %23 = tpu.matmul %16, %19, %cst_11 {dimension_numbers = #tpu.dot_dimension_numbers<[2], [2], [1], [1], [0, 0, 0, 1, 1, 1], [0], [0]>} : vector<2x8x8xbf16>, vector<2x8x8xbf16>, vector<2x8x8xf32> -> vector<2x8x8xf32>
    "tpu.trace_stop"() : () -> ()
    %24 = vector.shape_cast %13 : vector<8x8xf32> to vector<1x8x8xf32>
    %25 = vector.broadcast %24 : vector<1x8x8xf32> to vector<2x8x8xf32>
    %26 = arith.addf %23, %25 : vector<2x8x8xf32>
    %cst_12 = arith.constant dense<0xFF800000> : vector<2x8xf32>
    %27 = vector.multi_reduction <maximumf>, %26, %cst_12 [2] : vector<2x8x8xf32> to vector<2x8xf32>
    %28 = vector.shape_cast %27 : vector<2x8xf32> to vector<2x8x1xf32>
    %29 = vector.broadcast %28 : vector<2x8x1xf32> to vector<2x8x8xf32>
    %30 = arith.subf %26, %29 : vector<2x8x8xf32>
    %31 = math.exp %30 : vector<2x8x8xf32>
    %cst_13 = arith.constant dense<0.000000e+00> : vector<2x8xf32>
    %32 = vector.multi_reduction <add>, %31, %cst_13 [2] : vector<2x8x8xf32> to vector<2x8xf32>
    %33 = vector.shape_cast %32 : vector<2x8xf32> to vector<2x8x1xf32>
    %34 = tpu.reciprocal %33 {approx = true} : vector<2x8x1xf32> -> vector<2x8x1xf32>
    %35 = vector.broadcast %34 : vector<2x8x1xf32> to vector<2x8x8xf32>
    %36 = arith.mulf %31, %35 : vector<2x8x8xf32>
    %37 = arith.truncf %36 : vector<2x8x8xf32> to vector<2x8x8xbf16>
    "tpu.trace_start"() <{level = 10 : i32, message = "bqk,bkd->bqd"}> : () -> ()
    %cst_14 = arith.constant dense<0.000000e+00> : vector<2x8x8xf32>
    %38 = tpu.matmul %37, %22, %cst_14 {dimension_numbers = #tpu.dot_dimension_numbers<[2], [1], [1], [2], [0, 0, 0, 1, 1, 2], [0], [0]>} : vector<2x8x8xbf16>, vector<2x8x8xbf16>, vector<2x8x8xf32> -> vector<2x8x8xf32>
    "tpu.trace_stop"() : () -> ()
    %39 = vector.extract_strided_slice %12 {offsets = [0, 8], sizes = [16, 8], strides = [1, 1]} : vector<16x96xf32> to vector<16x8xf32>
    %40 = arith.truncf %39 : vector<16x8xf32> to vector<16x8xbf16>
    %41 = vector.shape_cast %40 : vector<16x8xbf16> to vector<2x8x8xbf16>
    %42 = vector.extract_strided_slice %12 {offsets = [0, 40], sizes = [16, 8], strides = [1, 1]} : vector<16x96xf32> to vector<16x8xf32>
    %43 = arith.truncf %42 : vector<16x8xf32> to vector<16x8xbf16>
    %44 = vector.shape_cast %43 : vector<16x8xbf16> to vector<2x8x8xbf16>
    %45 = vector.extract_strided_slice %12 {offsets = [0, 72], sizes = [16, 8], strides = [1, 1]} : vector<16x96xf32> to vector<16x8xf32>
    %46 = arith.truncf %45 : vector<16x8xf32> to vector<16x8xbf16>
    %47 = vector.shape_cast %46 : vector<16x8xbf16> to vector<2x8x8xbf16>
    "tpu.trace_start"() <{level = 10 : i32, message = "bqd,bkd->bqk"}> : () -> ()
    %cst_15 = arith.constant dense<0.000000e+00> : vector<2x8x8xf32>
    %48 = tpu.matmul %41, %44, %cst_15 {dimension_numbers = #tpu.dot_dimension_numbers<[2], [2], [1], [1], [0, 0, 0, 1, 1, 1], [0], [0]>} : vector<2x8x8xbf16>, vector<2x8x8xbf16>, vector<2x8x8xf32> -> vector<2x8x8xf32>
    "tpu.trace_stop"() : () -> ()
    %49 = vector.shape_cast %13 : vector<8x8xf32> to vector<1x8x8xf32>
    %50 = vector.broadcast %49 : vector<1x8x8xf32> to vector<2x8x8xf32>
    %51 = arith.addf %48, %50 : vector<2x8x8xf32>
    %cst_16 = arith.constant dense<0xFF800000> : vector<2x8xf32>
    %52 = vector.multi_reduction <maximumf>, %51, %cst_16 [2] : vector<2x8x8xf32> to vector<2x8xf32>
    %53 = vector.shape_cast %52 : vector<2x8xf32> to vector<2x8x1xf32>
    %54 = vector.broadcast %53 : vector<2x8x1xf32> to vector<2x8x8xf32>
    %55 = arith.subf %51, %54 : vector<2x8x8xf32>
    %56 = math.exp %55 : vector<2x8x8xf32>
    %cst_17 = arith.constant dense<0.000000e+00> : vector<2x8xf32>
    %57 = vector.multi_reduction <add>, %56, %cst_17 [2] : vector<2x8x8xf32> to vector<2x8xf32>
    %58 = vector.shape_cast %57 : vector<2x8xf32> to vector<2x8x1xf32>
    %59 = tpu.reciprocal %58 {approx = true} : vector<2x8x1xf32> -> vector<2x8x1xf32>
    %60 = vector.broadcast %59 : vector<2x8x1xf32> to vector<2x8x8xf32>
    %61 = arith.mulf %56, %60 : vector<2x8x8xf32>
    %62 = arith.truncf %61 : vector<2x8x8xf32> to vector<2x8x8xbf16>
    "tpu.trace_start"() <{level = 10 : i32, message = "bqk,bkd->bqd"}> : () -> ()
    %cst_18 = arith.constant dense<0.000000e+00> : vector<2x8x8xf32>
    %63 = tpu.matmul %62, %47, %cst_18 {dimension_numbers = #tpu.dot_dimension_numbers<[2], [1], [1], [2], [0, 0, 0, 1, 1, 2], [0], [0]>} : vector<2x8x8xbf16>, vector<2x8x8xbf16>, vector<2x8x8xf32> -> vector<2x8x8xf32>
    "tpu.trace_stop"() : () -> ()
    %64 = vector.extract_strided_slice %12 {offsets = [0, 16], sizes = [16, 8], strides = [1, 1]} : vector<16x96xf32> to vector<16x8xf32>
    %65 = arith.truncf %64 : vector<16x8xf32> to vector<16x8xbf16>
    %66 = vector.shape_cast %65 : vector<16x8xbf16> to vector<2x8x8xbf16>
    %67 = vector.extract_strided_slice %12 {offsets = [0, 48], sizes = [16, 8], strides = [1, 1]} : vector<16x96xf32> to vector<16x8xf32>
    %68 = arith.truncf %67 : vector<16x8xf32> to vector<16x8xbf16>
    %69 = vector.shape_cast %68 : vector<16x8xbf16> to vector<2x8x8xbf16>
    %70 = vector.extract_strided_slice %12 {offsets = [0, 80], sizes = [16, 8], strides = [1, 1]} : vector<16x96xf32> to vector<16x8xf32>
    %71 = arith.truncf %70 : vector<16x8xf32> to vector<16x8xbf16>
    %72 = vector.shape_cast %71 : vector<16x8xbf16> to vector<2x8x8xbf16>
    "tpu.trace_start"() <{level = 10 : i32, message = "bqd,bkd->bqk"}> : () -> ()
    %cst_19 = arith.constant dense<0.000000e+00> : vector<2x8x8xf32>
    %73 = tpu.matmul %66, %69, %cst_19 {dimension_numbers = #tpu.dot_dimension_numbers<[2], [2], [1], [1], [0, 0, 0, 1, 1, 1], [0], [0]>} : vector<2x8x8xbf16>, vector<2x8x8xbf16>, vector<2x8x8xf32> -> vector<2x8x8xf32>
    "tpu.trace_stop"() : () -> ()
    %74 = vector.shape_cast %13 : vector<8x8xf32> to vector<1x8x8xf32>
    %75 = vector.broadcast %74 : vector<1x8x8xf32> to vector<2x8x8xf32>
    %76 = arith.addf %73, %75 : vector<2x8x8xf32>
    %cst_20 = arith.constant dense<0xFF800000> : vector<2x8xf32>
    %77 = vector.multi_reduction <maximumf>, %76, %cst_20 [2] : vector<2x8x8xf32> to vector<2x8xf32>
    %78 = vector.shape_cast %77 : vector<2x8xf32> to vector<2x8x1xf32>
    %79 = vector.broadcast %78 : vector<2x8x1xf32> to vector<2x8x8xf32>
    %80 = arith.subf %76, %79 : vector<2x8x8xf32>
    %81 = math.exp %80 : vector<2x8x8xf32>
    %cst_21 = arith.constant dense<0.000000e+00> : vector<2x8xf32>
    %82 = vector.multi_reduction <add>, %81, %cst_21 [2] : vector<2x8x8xf32> to vector<2x8xf32>
    %83 = vector.shape_cast %82 : vector<2x8xf32> to vector<2x8x1xf32>
    %84 = tpu.reciprocal %83 {approx = true} : vector<2x8x1xf32> -> vector<2x8x1xf32>
    %85 = vector.broadcast %84 : vector<2x8x1xf32> to vector<2x8x8xf32>
    %86 = arith.mulf %81, %85 : vector<2x8x8xf32>
    %87 = arith.truncf %86 : vector<2x8x8xf32> to vector<2x8x8xbf16>
    "tpu.trace_start"() <{level = 10 : i32, message = "bqk,bkd->bqd"}> : () -> ()
    %cst_22 = arith.constant dense<0.000000e+00> : vector<2x8x8xf32>
    %88 = tpu.matmul %87, %72, %cst_22 {dimension_numbers = #tpu.dot_dimension_numbers<[2], [1], [1], [2], [0, 0, 0, 1, 1, 2], [0], [0]>} : vector<2x8x8xbf16>, vector<2x8x8xbf16>, vector<2x8x8xf32> -> vector<2x8x8xf32>
    "tpu.trace_stop"() : () -> ()
    %89 = vector.extract_strided_slice %12 {offsets = [0, 24], sizes = [16, 8], strides = [1, 1]} : vector<16x96xf32> to vector<16x8xf32>
    %90 = arith.truncf %89 : vector<16x8xf32> to vector<16x8xbf16>
    %91 = vector.shape_cast %90 : vector<16x8xbf16> to vector<2x8x8xbf16>
    %92 = vector.extract_strided_slice %12 {offsets = [0, 56], sizes = [16, 8], strides = [1, 1]} : vector<16x96xf32> to vector<16x8xf32>
    %93 = arith.truncf %92 : vector<16x8xf32> to vector<16x8xbf16>
    %94 = vector.shape_cast %93 : vector<16x8xbf16> to vector<2x8x8xbf16>
    %95 = vector.extract_strided_slice %12 {offsets = [0, 88], sizes = [16, 8], strides = [1, 1]} : vector<16x96xf32> to vector<16x8xf32>
    %96 = arith.truncf %95 : vector<16x8xf32> to vector<16x8xbf16>
    %97 = vector.shape_cast %96 : vector<16x8xbf16> to vector<2x8x8xbf16>
    "tpu.trace_start"() <{level = 10 : i32, message = "bqd,bkd->bqk"}> : () -> ()
    %cst_23 = arith.constant dense<0.000000e+00> : vector<2x8x8xf32>
    %98 = tpu.matmul %91, %94, %cst_23 {dimension_numbers = #tpu.dot_dimension_numbers<[2], [2], [1], [1], [0, 0, 0, 1, 1, 1], [0], [0]>} : vector<2x8x8xbf16>, vector<2x8x8xbf16>, vector<2x8x8xf32> -> vector<2x8x8xf32>
    "tpu.trace_stop"() : () -> ()
    %99 = vector.shape_cast %13 : vector<8x8xf32> to vector<1x8x8xf32>
    %100 = vector.broadcast %99 : vector<1x8x8xf32> to vector<2x8x8xf32>
    %101 = arith.addf %98, %100 : vector<2x8x8xf32>
    %cst_24 = arith.constant dense<0xFF800000> : vector<2x8xf32>
    %102 = vector.multi_reduction <maximumf>, %101, %cst_24 [2] : vector<2x8x8xf32> to vector<2x8xf32>
    %103 = vector.shape_cast %102 : vector<2x8xf32> to vector<2x8x1xf32>
    %104 = vector.broadcast %103 : vector<2x8x1xf32> to vector<2x8x8xf32>
    %105 = arith.subf %101, %104 : vector<2x8x8xf32>
    %106 = math.exp %105 : vector<2x8x8xf32>
    %cst_25 = arith.constant dense<0.000000e+00> : vector<2x8xf32>
    %107 = vector.multi_reduction <add>, %106, %cst_25 [2] : vector<2x8x8xf32> to vector<2x8xf32>
    %108 = vector.shape_cast %107 : vector<2x8xf32> to vector<2x8x1xf32>
    %109 = tpu.reciprocal %108 {approx = true} : vector<2x8x1xf32> -> vector<2x8x1xf32>
    %110 = vector.broadcast %109 : vector<2x8x1xf32> to vector<2x8x8xf32>
    %111 = arith.mulf %106, %110 : vector<2x8x8xf32>
    %112 = arith.truncf %111 : vector<2x8x8xf32> to vector<2x8x8xbf16>
    "tpu.trace_start"() <{level = 10 : i32, message = "bqk,bkd->bqd"}> : () -> ()
    %cst_26 = arith.constant dense<0.000000e+00> : vector<2x8x8xf32>
    %113 = tpu.matmul %112, %97, %cst_26 {dimension_numbers = #tpu.dot_dimension_numbers<[2], [1], [1], [2], [0, 0, 0, 1, 1, 2], [0], [0]>} : vector<2x8x8xbf16>, vector<2x8x8xbf16>, vector<2x8x8xf32> -> vector<2x8x8xf32>
    "tpu.trace_stop"() : () -> ()
    %114 = tpu.concatenate %38, %63, %88, %113 in 2 : vector<2x8x8xf32>, vector<2x8x8xf32>, vector<2x8x8xf32>, vector<2x8x8xf32> -> vector<2x8x32xf32>
    %115 = vector.shape_cast %114 : vector<2x8x32xf32> to vector<16x32xf32>
    %116 = arith.truncf %115 : vector<16x32xf32> to vector<16x32xbf16>
    %c0_27 = arith.constant 0 : index
    %c0_28 = arith.constant 0 : index
    %c0_29 = arith.constant 0 : index
    %117 = vector.load %arg5[%c0_27, %c0_28, %c0_29] : memref<1x32x32xbf16, #tpu.memory_space<vmem>>, vector<1x32x32xbf16>
    %118 = vector.shape_cast %117 : vector<1x32x32xbf16> to vector<32x32xbf16>
    %cst_30 = arith.constant dense<0.000000e+00> : vector<16x32xf32>
    %119 = tpu.matmul %116, %118, %cst_30 {dimension_numbers = #tpu.dot_dimension_numbers<[1], [0], [0], [1], [0, 0, 1, 1], [], []>} : vector<16x32xbf16>, vector<32x32xbf16>, vector<16x32xf32> -> vector<16x32xf32>
    %c0_31 = arith.constant 0 : index
    %c0_32 = arith.constant 0 : index
    %c0_33 = arith.constant 0 : index
    %120 = vector.load %arg6[%c0_31, %c0_32, %c0_33] : memref<1x1x32xf32, #tpu.memory_space<vmem>>, vector<1x1x32xf32>
    %121 = vector.shape_cast %120 : vector<1x1x32xf32> to vector<1x32xf32>
    %122 = vector.broadcast %121 : vector<1x32xf32> to vector<16x32xf32>
    %123 = arith.addf %119, %122 : vector<16x32xf32>
    %124 = arith.addf %4, %123 : vector<16x32xf32>
    %c0_34 = arith.constant 0 : index
    %c0_35 = arith.constant 0 : index
    %c0_36 = arith.constant 0 : index
    %125 = vector.load %arg7[%c0_34, %c0_35, %c0_36] : memref<1x1x32xf32, #tpu.memory_space<vmem>>, vector<1x1x32xf32>
    %126 = vector.shape_cast %125 : vector<1x1x32xf32> to vector<1x32xf32>
    %c0_37 = arith.constant 0 : index
    %c0_38 = arith.constant 0 : index
    %c0_39 = arith.constant 0 : index
    %127 = vector.load %arg8[%c0_37, %c0_38, %c0_39] : memref<1x1x32xf32, #tpu.memory_space<vmem>>, vector<1x1x32xf32>
    %128 = vector.shape_cast %127 : vector<1x1x32xf32> to vector<1x32xf32>
    %cst_40 = arith.constant dense<0.000000e+00> : vector<16xf32>
    %129 = vector.multi_reduction <add>, %124, %cst_40 [1] : vector<16x32xf32> to vector<16xf32>
    %130 = vector.shape_cast %129 : vector<16xf32> to vector<16x1xf32>
    %cst_41 = arith.constant 3.200000e+01 : f32
    %131 = vector.broadcast %cst_41 : f32 to vector<16x1xf32>
    %132 = arith.divf %130, %131 : vector<16x1xf32>
    %133 = vector.broadcast %132 : vector<16x1xf32> to vector<16x32xf32>
    %134 = arith.subf %124, %133 : vector<16x32xf32>
    %135 = arith.mulf %134, %134 : vector<16x32xf32>
    %cst_42 = arith.constant dense<0.000000e+00> : vector<16xf32>
    %136 = vector.multi_reduction <add>, %135, %cst_42 [1] : vector<16x32xf32> to vector<16xf32>
    %137 = vector.shape_cast %136 : vector<16xf32> to vector<16x1xf32>
    %cst_43 = arith.constant 3.200000e+01 : f32
    %138 = vector.broadcast %cst_43 : f32 to vector<16x1xf32>
    %139 = arith.divf %137, %138 : vector<16x1xf32>
    %140 = vector.broadcast %132 : vector<16x1xf32> to vector<16x32xf32>
    %141 = arith.subf %124, %140 : vector<16x32xf32>
    %cst_44 = arith.constant 9.99999974E-6 : f32
    %142 = vector.broadcast %cst_44 : f32 to vector<16x1xf32>
    %143 = arith.addf %139, %142 : vector<16x1xf32>
    %144 = math.rsqrt %143 : vector<16x1xf32>
    %145 = vector.broadcast %144 : vector<16x1xf32> to vector<16x32xf32>
    %146 = arith.mulf %141, %145 : vector<16x32xf32>
    %147 = vector.broadcast %126 : vector<1x32xf32> to vector<16x32xf32>
    %148 = arith.mulf %146, %147 : vector<16x32xf32>
    %149 = vector.broadcast %128 : vector<1x32xf32> to vector<16x32xf32>
    %150 = arith.addf %148, %149 : vector<16x32xf32>
    %151 = arith.truncf %150 : vector<16x32xf32> to vector<16x32xbf16>
    %c0_45 = arith.constant 0 : index
    %c0_46 = arith.constant 0 : index
    %c0_47 = arith.constant 0 : index
    %152 = vector.load %arg11[%c0_45, %c0_46, %c0_47] : memref<1x32x64xbf16, #tpu.memory_space<vmem>>, vector<1x32x64xbf16>
    %153 = vector.shape_cast %152 : vector<1x32x64xbf16> to vector<32x64xbf16>
    %cst_48 = arith.constant dense<0.000000e+00> : vector<16x64xf32>
    %154 = tpu.matmul %151, %153, %cst_48 {dimension_numbers = #tpu.dot_dimension_numbers<[1], [0], [0], [1], [0, 0, 1, 1], [], []>} : vector<16x32xbf16>, vector<32x64xbf16>, vector<16x64xf32> -> vector<16x64xf32>
    %c0_49 = arith.constant 0 : index
    %c0_50 = arith.constant 0 : index
    %c0_51 = arith.constant 0 : index
    %155 = vector.load %arg12[%c0_49, %c0_50, %c0_51] : memref<1x1x64xf32, #tpu.memory_space<vmem>>, vector<1x1x64xf32>
    %156 = vector.shape_cast %155 : vector<1x1x64xf32> to vector<1x64xf32>
    %157 = vector.broadcast %156 : vector<1x64xf32> to vector<16x64xf32>
    %158 = arith.addf %154, %157 : vector<16x64xf32>
    %cst_52 = arith.constant 0.000000e+00 : f32
    %159 = vector.broadcast %cst_52 : f32 to vector<16x64xf32>
    %160 = arith.maximumf %158, %159 : vector<16x64xf32>
    %161 = arith.truncf %160 : vector<16x64xf32> to vector<16x64xbf16>
    %c0_53 = arith.constant 0 : index
    %c0_54 = arith.constant 0 : index
    %c0_55 = arith.constant 0 : index
    %162 = vector.load %arg13[%c0_53, %c0_54, %c0_55] : memref<1x64x32xbf16, #tpu.memory_space<vmem>>, vector<1x64x32xbf16>
    %163 = vector.shape_cast %162 : vector<1x64x32xbf16> to vector<64x32xbf16>
    %cst_56 = arith.constant dense<0.000000e+00> : vector<16x32xf32>
    %164 = tpu.matmul %161, %163, %cst_56 {dimension_numbers = #tpu.dot_dimension_numbers<[1], [0], [0], [1], [0, 0, 1, 1], [], []>} : vector<16x64xbf16>, vector<64x32xbf16>, vector<16x32xf32> -> vector<16x32xf32>
    %c0_57 = arith.constant 0 : index
    %c0_58 = arith.constant 0 : index
    %c0_59 = arith.constant 0 : index
    %165 = vector.load %arg14[%c0_57, %c0_58, %c0_59] : memref<1x1x32xf32, #tpu.memory_space<vmem>>, vector<1x1x32xf32>
    %166 = vector.shape_cast %165 : vector<1x1x32xf32> to vector<1x32xf32>
    %167 = vector.broadcast %166 : vector<1x32xf32> to vector<16x32xf32>
    %168 = arith.addf %164, %167 : vector<16x32xf32>
    %169 = arith.addf %150, %168 : vector<16x32xf32>
    %c0_60 = arith.constant 0 : index
    %c0_61 = arith.constant 0 : index
    %c0_62 = arith.constant 0 : index
    %170 = vector.load %arg9[%c0_60, %c0_61, %c0_62] : memref<1x1x32xf32, #tpu.memory_space<vmem>>, vector<1x1x32xf32>
    %171 = vector.shape_cast %170 : vector<1x1x32xf32> to vector<1x32xf32>
    %c0_63 = arith.constant 0 : index
    %c0_64 = arith.constant 0 : index
    %c0_65 = arith.constant 0 : index
    %172 = vector.load %arg10[%c0_63, %c0_64, %c0_65] : memref<1x1x32xf32, #tpu.memory_space<vmem>>, vector<1x1x32xf32>
    %173 = vector.shape_cast %172 : vector<1x1x32xf32> to vector<1x32xf32>
    %cst_66 = arith.constant dense<0.000000e+00> : vector<16xf32>
    %174 = vector.multi_reduction <add>, %169, %cst_66 [1] : vector<16x32xf32> to vector<16xf32>
    %175 = vector.shape_cast %174 : vector<16xf32> to vector<16x1xf32>
    %cst_67 = arith.constant 3.200000e+01 : f32
    %176 = vector.broadcast %cst_67 : f32 to vector<16x1xf32>
    %177 = arith.divf %175, %176 : vector<16x1xf32>
    %178 = vector.broadcast %177 : vector<16x1xf32> to vector<16x32xf32>
    %179 = arith.subf %169, %178 : vector<16x32xf32>
    %180 = arith.mulf %179, %179 : vector<16x32xf32>
    %cst_68 = arith.constant dense<0.000000e+00> : vector<16xf32>
    %181 = vector.multi_reduction <add>, %180, %cst_68 [1] : vector<16x32xf32> to vector<16xf32>
    %182 = vector.shape_cast %181 : vector<16xf32> to vector<16x1xf32>
    %cst_69 = arith.constant 3.200000e+01 : f32
    %183 = vector.broadcast %cst_69 : f32 to vector<16x1xf32>
    %184 = arith.divf %182, %183 : vector<16x1xf32>
    %185 = vector.broadcast %177 : vector<16x1xf32> to vector<16x32xf32>
    %186 = arith.subf %169, %185 : vector<16x32xf32>
    %cst_70 = arith.constant 9.99999974E-6 : f32
    %187 = vector.broadcast %cst_70 : f32 to vector<16x1xf32>
    %188 = arith.addf %184, %187 : vector<16x1xf32>
    %189 = math.rsqrt %188 : vector<16x1xf32>
    %190 = vector.broadcast %189 : vector<16x1xf32> to vector<16x32xf32>
    %191 = arith.mulf %186, %190 : vector<16x32xf32>
    %192 = vector.broadcast %171 : vector<1x32xf32> to vector<16x32xf32>
    %193 = arith.mulf %191, %192 : vector<16x32xf32>
    %194 = vector.broadcast %173 : vector<1x32xf32> to vector<16x32xf32>
    %195 = arith.addf %193, %194 : vector<16x32xf32>
    %196 = vector.shape_cast %195 : vector<16x32xf32> to vector<2x8x32xf32>
    %c0_71 = arith.constant 0 : index
    %c0_72 = arith.constant 0 : index
    %c0_73 = arith.constant 0 : index
    %197 = vector.load %arg16[%c0_71, %c0_72, %c0_73] : memref<2x8x32xf32, #tpu.memory_space<vmem>>, vector<2x8x32xf32>
    tpu.vector_store %arg16[%c0_71, %c0_72, %c0_73], %196 {strides = array<i32>} : memref<2x8x32xf32, #tpu.memory_space<vmem>>, vector<2x8x32xf32>,
    %c1_i32 = arith.constant 1 : i32
    %198 = arith.cmpi eq, %arg0, %c1_i32 : i32
    %199 = arith.extui %198 : i1 to i32
    %c0_i32_74 = arith.constant 0 : i32
    %200 = arith.cmpi ne, %199, %c0_i32_74 : i32
    scf.if %200 {
      %201 = vector.shape_cast %195 : vector<16x32xf32> to vector<2x8x32xf32>
      %202 = arith.truncf %201 : vector<2x8x32xf32> to vector<2x8x32xbf16>
      %c0_75 = arith.constant 0 : index
      %c0_76 = arith.constant 0 : index
      %c0_77 = arith.constant 0 : index
      %203 = vector.load %arg15[%c0_75, %c0_76, %c0_77] : memref<2x8x32xbf16, #tpu.memory_space<vmem>>, vector<2x8x32xbf16>
      tpu.vector_store %arg15[%c0_75, %c0_76, %c0_77], %202 {strides = array<i32>} : memref<2x8x32xbf16, #tpu.memory_space<vmem>>, vector<2x8x32xbf16>,
    } else {
    }
    return
  }
  func.func @transform_0(%arg0: i32) -> (i32, i32, i32) {
    %c0_i32 = arith.constant 0 : i32
    %c0_i32_0 = arith.constant 0 : i32
    %c0_i32_1 = arith.constant 0 : i32
    %c0_i32_2 = arith.constant 0 : i32
    return %c0_i32, %c0_i32_0, %c0_i32_1 : i32, i32, i32
  }
  func.func @transform_1(%arg0: i32) -> (i32, i32) {
    %c0_i32 = arith.constant 0 : i32
    %c0_i32_0 = arith.constant 0 : i32
    %c0_i32_1 = arith.constant 0 : i32
    return %c0_i32, %c0_i32_0 : i32, i32
  }
  func.func @transform_2(%arg0: i32) -> (i32, i32, i32) {
    %c0_i32 = arith.constant 0 : i32
    %c0_i32_0 = arith.constant 0 : i32
    %c0_i32_1 = arith.constant 0 : i32
    return %arg0, %c0_i32, %c0_i32_0 : i32, i32, i32
  }
  func.func @transform_3(%arg0: i32) -> (i32, i32, i32) {
    %c0_i32 = arith.constant 0 : i32
    %c0_i32_0 = arith.constant 0 : i32
    %c0_i32_1 = arith.constant 0 : i32
    return %arg0, %c0_i32, %c0_i32_0 : i32, i32, i32
  }
  func.func @transform_4(%arg0: i32) -> (i32, i32, i32) {
    %c0_i32 = arith.constant 0 : i32
    %c0_i32_0 = arith.constant 0 : i32
    %c0_i32_1 = arith.constant 0 : i32
    return %arg0, %c0_i32, %c0_i32_0 : i32, i32, i32
  }
  func.func @transform_5(%arg0: i32) -> (i32, i32, i32) {
    %c0_i32 = arith.constant 0 : i32
    %c0_i32_0 = arith.constant 0 : i32
    %c0_i32_1 = arith.constant 0 : i32
    return %arg0, %c0_i32, %c0_i32_0 : i32, i32, i32
  }
  func.func @transform_6(%arg0: i32) -> (i32, i32, i32) {
    %c0_i32 = arith.constant 0 : i32
    %c0_i32_0 = arith.constant 0 : i32
    %c0_i32_1 = arith.constant 0 : i32
    return %arg0, %c0_i32, %c0_i32_0 : i32, i32, i32
  }
  func.func @transform_7(%arg0: i32) -> (i32, i32, i32) {
    %c0_i32 = arith.constant 0 : i32
    %c0_i32_0 = arith.constant 0 : i32
    %c0_i32_1 = arith.constant 0 : i32
    return %arg0, %c0_i32, %c0_i32_0 : i32, i32, i32
  }
  func.func @transform_8(%arg0: i32) -> (i32, i32, i32) {
    %c0_i32 = arith.constant 0 : i32
    %c0_i32_0 = arith.constant 0 : i32
    %c0_i32_1 = arith.constant 0 : i32
    return %arg0, %c0_i32, %c0_i32_0 : i32, i32, i32
  }
  func.func @transform_9(%arg0: i32) -> (i32, i32, i32) {
    %c0_i32 = arith.constant 0 : i32
    %c0_i32_0 = arith.constant 0 : i32
    %c0_i32_1 = arith.constant 0 : i32
    return %arg0, %c0_i32, %c0_i32_0 : i32, i32, i32
  }
  func.func @transform_10(%arg0: i32) -> (i32, i32, i32) {
    %c0_i32 = arith.constant 0 : i32
    %c0_i32_0 = arith.constant 0 : i32
    %c0_i32_1 = arith.constant 0 : i32
    return %arg0, %c0_i32, %c0_i32_0 : i32, i32, i32
  }
  func.func @transform_11(%arg0: i32) -> (i32, i32, i32) {
    %c0_i32 = arith.constant 0 : i32
    %c0_i32_0 = arith.constant 0 : i32
    %c0_i32_1 = arith.constant 0 : i32
    return %arg0, %c0_i32, %c0_i32_0 : i32, i32, i32
  }
  func.func @transform_12(%arg0: i32) -> (i32, i32, i32) {
    %c0_i32 = arith.constant 0 : i32
    %c0_i32_0 = arith.constant 0 : i32
    %c0_i32_1 = arith.constant 0 : i32
    return %arg0, %c0_i32, %c0_i32_0 : i32, i32, i32
  }
  func.func @transform_13(%arg0: i32) -> (i32, i32, i32) {
    %c0_i32 = arith.constant 0 : i32
    %c0_i32_0 = arith.constant 0 : i32
    %c0_i32_1 = arith.constant 0 : i32
    return %arg0, %c0_i32, %c0_i32_0 : i32, i32, i32
  }
  func.func @transform_14(%arg0: i32) -> (i32, i32, i32) {
    %c0_i32 = arith.constant 0 : i32
    %c0_i32_0 = arith.constant 0 : i32
    %c0_i32_1 = arith.constant 0 : i32
    %c0_i32_2 = arith.constant 0 : i32
    return %c0_i32, %c0_i32_0, %c0_i32_1 : i32, i32, i32
  }
}

</mosaic_0001>

<bundles_post_ra>
// kernel: tpu_custom_call.1
= control target key start
LH: loop header
LB: loop body
LE: loop exit
PB: predicated region body
PF: predicated region fallthrough
CT: control target
= control target key end

     0   :  { %s2691_s0 = inlined_call_operand.hbm [shape: f32[2,8,32], index: 0, kind: input, shape index: {}]   ;;  %s2692_s1 = inlined_call_operand.hbm [shape: f32[8,8], index: 1, kind: input, shape index: {}]   ;;  %s2693_s2 = inlined_call_operand.vmem [shape: bf16[2,32,96], index: 2, kind: input, shape index: {}]   ;;  %s2694_s3 = inlined_call_operand.hbm [shape: f32[2,1,96], index: 3, kind: input, shape index: {}]   ;;  %s2695_s4 = inlined_call_operand.vmem [shape: bf16[2,32,32], index: 4, kind: input, shape index: {}]   ;;  %s2696_s5 = inlined_call_operand.vmem [shape: f32[2,1,32], index: 5, kind: input, shape index: {}]   ;;  %s2697_s6 = inlined_call_operand.vmem [shape: f32[2,1,32], index: 6, kind: input, shape index: {}]   ;;  %s2698_s7 = inlined_call_operand.hbm [shape: f32[2,1,32], index: 7, kind: input, shape index: {}]   ;;  %s2699_s8 = inlined_call_operand.vmem [shape: f32[2,1,32], index: 8, kind: input, shape index: {}]   ;;  %s2700_s9 = inlined_call_operand.hbm [shape: f32[2,1,32], index: 9, kind: input, shape index: {}]   ;;  %s2701_s10 = inlined_call_operand.vmem [shape: bf16[2,32,64], index: 10, kind: input, shape index: {}]   ;;  %s2702_s11 = inlined_call_operand.vmem [shape: f32[2,1,64], index: 11, kind: input, shape index: {}]   ;;  %s2703_s12 = inlined_call_operand.vmem [shape: bf16[2,64,32], index: 12, kind: input, shape index: {}]   ;;  %s2704_s13 = inlined_call_operand.vmem [shape: f32[2,1,32], index: 13, kind: input, shape index: {}]   ;;  %s2705_s14 = inlined_call_operand.hbm [shape: bf16[2,8,32], index: 14, kind: output, shape index: {}]  }
   0x1   :  { %2709 = sst [smem:[#allocation19_spill]] %s2691_s0 }
   0x2   :  { %2710 = sst [smem:[#allocation20_spill]] %s2692_s1 }
   0x3   :  { %2711 = sst [smem:[#allocation21_spill]] %s2693_s2 }
   0x4   :  { %2712 = sst [smem:[#allocation22_spill]] %s2694_s3 }
   0x5   :  { %2713 = sst [smem:[#allocation23_spill]] %s2695_s4 }
   0x6   :  { %2714 = sst [smem:[#allocation24_spill]] %s2698_s7 }
   0x7   :  { %2715 = sst [smem:[#allocation25_spill]] %s2701_s10 }
   0x8   :  { %2716 = sst [smem:[#allocation26_spill]] %s2702_s11 }
   0x9   :  { %2717 = sst [smem:[#allocation27_spill]] %s2703_s12 }
   0xa   :  { %2718 = sst [smem:[#allocation28_spill]] %s2704_s13 }
   0xb   :  { %2719 = sst [smem:[#allocation29_spill]] %s2705_s14 }
   0xc   :  { %19 = vsyncpa [#allocation4], 0 }
   0xd   :  { %20 = vsyncpa [#allocation7], 0 }
   0xe   :  { %21 = vsyncpa [#allocation5], 0  ;;  %s2296_s29 = smov 0   ;;  %s2298_s30 = smov 0  }
   0xf   :  { %s2300_s15 = smov 0   ;;  %s2302_s16 = smov 0  }
  0x10 LB: > { %2720 = sst [smem:[#allocation16_spill]] %s2194_s15  ;;  %s2315_s17 = sadd.s32 4294967295, %s2198_s16   ;;  %s2198_s16 = sphi %s2302_s16, %s2744_s16   ;;  %s2194_s15 = sphi %s2300_s15, %s2746_s15   ;;  %s2190_s30 = sphi %s2298_s30, %s2748_s30   ;;  %s2186_s29 = sphi %s2296_s29, %s2747_s29  }
  0x11   : > { %p115_p0 = scmp.ne.s32.totalorder %s2190_s30, %s2186_s29  ;;  %p116_p1 = scmp.eq.s32.totalorder %s2315_s17, 0 }
  0x12   : > { %p1719_p2 = scmp.ge.s32.totalorder %s2198_s16, 1  ;;  %p407_p3 = scmp.lt.s32.totalorder %s2198_s16, 3 }
  0x13   : > { %p2324_p5 = por %p116_p1, %p115_p0  ;;  %s2722_s0 = sld [smem:[#allocation19_spill]] }
  0x14   : > { %p2331_p6 = pnand %p1719_p2, %p407_p3  ;;  %s2200_s23 = smov [#allocation3]  }
  0x15   : > { %s420_s24 = sshll.u32 %s2200_s23, 4  ;;  %s2344_s26 = sadd.s32 1, %s2198_s16   ;;  %s421_s24 = int_to_ptr.vmem [resolvable:$true] %s420_s24 }
  0x16   : > { %p1832_p7 = pneg %p2331_p6  ;;  %2725 = sst [smem:[#allocation17_spill]] %s2344_s26 }
  0x17   : > { %s2201_s27 = smov 128   ;;  %s2202_s28 = smov 8  }
  0x18   : > { %p2339_p8 = pnand %p1832_p7, %p116_p1  ;;  %s99_s29 = ssub.s32 %s2198_s16, %s2344_s26 }
  0x19   : > { %s418_s21 = sshll.u32 %s2722_s0, 4  ;;  %s102_s19 = sadd.s32 1, %s2194_s15  ;;  %s419_s21 = int_to_ptr.hbm [resolvable:$true] %s418_s21 }
  0x1a   : > { %1835 = dma.hbm_to_vmem [thread:$0]  (!%p2339_p8), %s419_s21, 256, %s421_s24, [#allocation4], %s2201_s27, %s2201_s27, %s2202_s28  }
  0x1b   : > { %p100_p9 = scmp.eq.s32.totalorder %s99_s29, 0  ;;  %p109_p10 = scmp.ne.s32.totalorder %s2194_s15, %s2190_s30 }
  0x1c   : > { %p110_p11 = scmp.eq.s32.totalorder %s2198_s16, 0  ;;  %p1851_p12 = scmp.lt.s32.totalorder %s2198_s16, 2 }
  0x1d   : > { %s2356_s20 = scalar_select %p100_p9, %s2194_s15, %s102_s19  }
  0x1e   : > { %p111_p13 = por %p110_p11, %p109_p10  ;;  %s454_s23 = sand.u32 1, %s2198_s16  }
  0x1f   : > { %2726 = sst [smem:[#allocation18_spill]] %s2356_s20  ;;  %s2360_s0 = sand.u32 1, %s2194_s15  }
  0x20   : > { %s2727_s3 = sld [smem:[#allocation22_spill]]  ;;  %s457_s24 = scalar_lea.vmem [#allocation8], %s2360_s0 }
  0x21   : > { %s464_s27 = sshll.u32 %s457_s24, 4  ;;  %p2367_p0 = pnand %p1851_p12, %p111_p13  ;;  %s465_s27 = int_to_ptr.vmem [resolvable:$true] %s464_s27 }
  0x22   : > { %s2729_s7 = sld [smem:[#allocation24_spill]]  ;;  %s494_s15 = scalar_lea.vmem [#allocation9], %s2360_s0 }
  0x23   : > { %s2376_s12 = sshll.u32 %s494_s15, 4  ;;  %p2008_p3 = pneg %p2367_p0  ;;  %s502_s12 = int_to_ptr.vmem [resolvable:$true] %s2376_s12 }
  0x26   : > { %s460_s13 = scalar_lea.hbm %s2727_s3, %s2198_s16  ;;  %s2011_s11 = scalar_lea.hbm %s2727_s3, 2 }
  0x27   : > { %s462_s21 = sshll.u32 %s460_s13, 4  ;;  %s2380_s13 = scalar_lea.sflag [#allocation4], %s454_s23  ;;  %s463_s21 = int_to_ptr.hbm [resolvable:$true] %s462_s21 }
  0x28   : > { %s497_s20 = scalar_lea.hbm %s2729_s7, %s2198_s16  ;;  %s2004_s24 = sshra.s32 %s463_s21, 4  ;;  %s2005_s24 = int_to_ptr.hbm [resolvable:$true] %s2004_s24 }
  0x29   : > { %s2378_s14 = sshll.u32 %s497_s20, 4  ;;  %s2006_s26 = scalar_lea.hbm %s2005_s24, 1  ;;  %s500_s14 = int_to_ptr.hbm [resolvable:$true] %s2378_s14 }
  0x2a   : > { %p2007_p2 = scmp.ne.s32.totalorder %s2005_s24, %s2006_s26  ;;  %p2012_p10 = scmp.lt.s32.totalorder %s2005_s24, %s2727_s3 }
  0x2b   : > { %p2013_p11 = scmp.lt.s32.totalorder %s2011_s11, %s2006_s26 }
  0x2c   : > { %p2009_p7 = pnand %p2008_p3, %p2007_p2 }
  0x2d   : > { %p2014_p12 = por %p2013_p11, %p2012_p10 }
  0x2e   : > { %p2010_p9 = pneg %p2009_p7 }
  0x30   : > { %p2015_p13 = pnand %p2014_p12, %p2010_p9 }
  0x32   : > { %2018 = shalt.err (!%p2015_p13)
}
  0x33   : > { %1842 = dma.hbm_to_vmem [thread:$0]  (!%p2367_p0), %s463_s21, 16, %s465_s27, %s2380_s13  }
  0x34   : > { %s2034_s20 = sshra.s32 %s500_s14, 4  ;;  %s2041_s26 = scalar_lea.hbm %s2729_s7, 2  ;;  %s2035_s20 = int_to_ptr.hbm [resolvable:$true] %s2034_s20 }
  0x35   : > { %s2036_s23 = scalar_lea.hbm %s2035_s20, 1  ;;  %p2042_p9 = scmp.lt.s32.totalorder %s2035_s20, %s2729_s7 }
  0x36   : > { %p2037_p2 = scmp.ne.s32.totalorder %s2035_s20, %s2036_s23  ;;  %p2043_p10 = scmp.lt.s32.totalorder %s2041_s26, %s2036_s23 }
  0x38   : > { %p2039_p7 = pnand %p2037_p2, %p2008_p3  ;;  %p2044_p11 = por %p2043_p10, %p2042_p9 }
  0x3a   : > { %p2040_p4 = pneg %p2039_p7 }
  0x3c   : > { %p2045_p12 = pnand %p2044_p11, %p2040_p4 }
  0x3e   : > { %2048 = shalt.err (!%p2045_p12)
}
  0x3f   : > { %1845 = dma.hbm_to_vmem [thread:$0]  (!%p2367_p0), %s500_s14, 16, %s502_s12, %s2380_s13  }
  0x40   : > { %s2730_s1 = sld [smem:[#allocation20_spill]]  ;;  %s2203_s15 = smov [#allocation6]  }
  0x41   : > { %s435_s10 = sshll.u32 %s2203_s15, 4  ;;  %s520_s11 = scalar_lea.hbm %s2700_s9, %s2198_s16  ;;  %s436_s10 = int_to_ptr.vmem [resolvable:$true] %s435_s10 }
  0x42   : > { %s517_s26 = scalar_lea.vmem [#allocation10], %s2360_s0  ;;  %s522_s29 = sshll.u32 %s520_s11, 4  ;;  %s523_s29 = int_to_ptr.hbm [resolvable:$true] %s522_s29 }
  0x43   : > { %s524_s24 = sshll.u32 %s517_s26, 4  ;;  %s2094_s12 = sshra.s32 %s523_s29, 4  ;;  %s525_s24 = int_to_ptr.vmem [resolvable:$true] %s524_s24  ;;  %s2095_s12 = int_to_ptr.hbm [resolvable:$true] %s2094_s12 }
  0x44   : > { %s2096_s14 = scalar_lea.hbm %s2095_s12, 1  ;;  %s2101_s27 = scalar_lea.hbm %s2700_s9, 2 }
  0x45   : > { %p2097_p4 = scmp.ne.s32.totalorder %s2095_s12, %s2096_s14  ;;  %p2103_p7 = scmp.lt.s32.totalorder %s2101_s27, %s2096_s14 }
  0x46   : > { %s433_s19 = sshll.u32 %s2730_s1, 4  ;;  %s434_s19 = int_to_ptr.hbm [resolvable:$true] %s433_s19 }
  0x47   : > { %1838 = dma.hbm_to_vmem [thread:$0]  (!%p2339_p8), %s434_s19, 128, %s436_s10, [#allocation7]  }
  0x48   : > { %p2099_p13 = pnand %p2097_p4, %p2008_p3  ;;  %p2102_p8 = scmp.lt.s32.totalorder %s2095_s12, %s2700_s9 }
  0x4a   : > { %p2100_p2 = pneg %p2099_p13  ;;  %p2104_p9 = por %p2103_p7, %p2102_p8 }
  0x4c   : > { %p2105_p10 = pnand %p2104_p9, %p2100_p2 }
  0x4e   : > { %2108 = shalt.err (!%p2105_p10)
}
  0x4f   : > { %1848 = dma.hbm_to_vmem [thread:$0]  (!%p2367_p0), %s523_s29, 16, %s525_s24, %s2380_s13  }
  0x50   : > { %561 = sbr.rel (%p2331_p6) target bundleno = 2088 (0x828), region = 76 }
  0x55   : > { %2169 = dma.done.wait (%p116_p1), [#allocation4], 256  }
  0x56   : > { %2171 = vsyncadd (%p116_p1), [#allocation4], 4294967040 }
  0x57   : > { %2173 = dma.done.wait (%p116_p1), [#allocation7], 128  }
  0x58   : > { %2175 = vsyncadd (%p116_p1), [#allocation7], 4294967168  ;;  %s573_s0 = sand.u32 1, %s2315_s17   ;;  %s2444_s16 = sand.u32 1, %s2190_s30  }
  0x59   : > { %s574_s22 = scalar_lea.sflag [#allocation4], %s573_s0 }
  0x5a   : > { %2177 = dma.done.wait (%p2324_p5), %s574_s22, 48  }
  0x5b   : > { %2179 = vsyncadd (%p2324_p5), %s574_s22, 4294967248  ;;  %p677_p6 = scmp.lt.s32.totalorder %s2315_s17, 1  ;;  %s2731_s2 = sld [smem:[#allocation21_spill]] }
  0x5c   : > { %s2732_s4 = sld [smem:[#allocation23_spill]]  ;;  %s585_s19 = scalar_lea.vmem [#allocation9], %s2444_s16 }
  0x5d   : > { %s2453_s13 = scalar_select %p677_p6, %s2315_s17, 1 }
  0x5e   : > { %s2733_s23 = sld [smem:[#allocation25_spill]]  ;;  %s594_s15 = scalar_lea.vmem [#allocation10], %s2444_s16 }
  0x5f   : > { %s1800_s10 = sshll.u32 %s2453_s13, 4  ;;  %s695_s0 = scalar_lea.vmem %s2699_s8, %s2453_s13 }
  0x60   : > { %s2734_s28 = sld [smem:[#allocation26_spill]]  ;;  %s1803_s29 = sshll.u32 %s2453_s13, 5 }
  0x61   : > { %s681_s24 = scalar_lea.vmem %s2731_s2, %s1800_s10  ;;  %s2735_s3 = sld [smem:[#allocation28_spill]] }
  0x62   : > { %s2466_s14 = scalar_lea.vmem %s2732_s4, %s1800_s10  ;;  %s2736_s27 = sld [smem:[#allocation27_spill]] }
  0x63   : > { %p2737_p1 = scmp.ne.s32.totalorder %s2315_s17, 0 }
  0x64   : > { %s2479_s18 = scalar_lea.vmem %s2733_s23, %s1800_s10 }
  0x65   : > { %716 = sbr.rel (%p2737_p1) target bundleno = 109 (0x6d), region = 100 }
  0x66   : > { %s703_s1 = scalar_lea.vmem %s2734_s28, %s2453_s13 }
  0x67   : > { %s711_s4 = scalar_lea.vmem %s2735_s3, %s2453_s13 }
  0x68   : > { %s2493_s7 = scalar_lea.vmem %s2736_s27, %s1803_s29 }
  0x6a   : > { %v717_v0 = vld [vmem:[#allocation3] sm:$0xff]  ;;  %vm719_vm0 = vcmask 261120   ;;  %v718_v1 = vld [vmem:[#allocation3 + $0x8] sm:$0xff] }
  0x6b   : > { %720 = vst.msk [vmem:[#allocation2] sm:$0xff] %vm719_vm0, %v717_v0 }
  0x6c   : > { %721 = vst.msk [vmem:[#allocation2 + $0x8] sm:$0xff] %vm719_vm0, %v718_v1 }
  0x6d PF: > { %v1805_v2 = vld [vmem:[%s681_s24 + $0x8] sm:$0xff]  ;;  %v1804_v3 = vld [vmem:[%s681_s24] sm:$0xff]  ;;  %vm745_vm1 = vcmask 261120   ;;  %s2738_s2 = scalar_lea.vmem [#allocation8], %s2444_s16  ;;  %s2204_s3 = smov 120   ;;  %vm771_vm2 = vcmask 64512  }
  0x6e   : > { %755 = vmatpush.bf16.msra.mxu0 %v1805_v2  ;;  %v1924_v7 = vld [vmem:[%s2738_s2] ss:$0 sm:$0xff]  ;;  %s2205_s28 = smov 88   ;;  %s2206_s10 = smov 96   ;;  %vm844_vm3 = vcmask 1043456   ;;  %vm1244_vm4 = vcmask 130048  }
  0x6f   : > { %s2207_s24 = smov 112   ;;  %s2208_s27 = smov 80   ;;  %v763_v40 = vld [vmem:[#allocation6] sm:$0xff]  ;;  %vm1247_vm5 = vcmask 195584   ;;  %vm1430_vm13 = vcmask 523264  }
  0x70   : > { %s2209_s22 = smov 72   ;;  %s2210_s20 = smov 104  }
  0x71   : > { %s2211_s23 = smov 64   ;;  %s2212_s11 = smov 56  }
  0x72   : > { %v2499_v4 = vld [vmem:[#allocation2] sm:$0xff]  ;;  %756 = vmatpush.bf16.msra.mxu0 %v1804_v3  ;;  %s2213_s26 = smov 48   ;;  %s2214_s29 = smov 40  }
  0x73   : > { %v2501_v5 = vld [vmem:[#allocation2 + $0x8] sm:$0xff]  ;;  %s2215_s12 = smov 8   ;;  %s2216_s21 = smov 16  }
  0x74   : > { %v724_v6 = vpack.c.bf16 %v2501_v5, %v2499_v4  ;;  %s2217_s25 = smov 24   ;;  %p1795_p5 = scmp.ne.s32.totalorder %s2315_s17, 1 }
  0x76   : > { %1743 = vmatmul.msk.bf16.vlgmr.msra.gmra.mxu0 %vm745_vm1, %v724_v6 }
  0xf3   : > { %v758_v8 = vpop.f32.mrf.mxu0 }
  0xf4   : > { %v759_v9 = vadd.f32 %v1924_v7, %v758_v8 }
  0xf6   : > { %v764_v10 = vpack.c.bf16 %v759_v9, %v759_v9 }
  0xf8   : > { %v767_v11 = vunpack.c.l.b16 %v764_v10 }
  0xfa   : > { %v2508_v12 = vpack.c.b16 %v767_v11, %v767_v11 }
  0xfb   : > { %v760_v13 = vpop.f32.mrf.mxu0 }
  0xfc   : > { %v761_v14 = vadd.f32 %v1924_v7, %v760_v13  ;;  %882 = vrot.lane.b32.xlu2 %v2508_v12, %s2204_s3  ;;  %884 = vrot.lane.b32.xlu1 %v2508_v12, %s2205_s28 }
  0xfd   : > { %769 = vrot.lane.b32.xlu0 %v2508_v12, %s2206_s10 }
  0xfe   : > { %v765_v15 = vpack.c.bf16 %v761_v14, %v761_v14 }
 0x100   : > { %v792_v16 = vunpack.c.l.b16 %v765_v15 }
 0x102   : > { %v2513_v17 = vpack.c.b16 %v792_v16, %v792_v16 }
 0x104   : > { %905 = vrot.lane.b32.xlu2 %v2513_v17, %s2204_s3  ;;  %907 = vrot.lane.b32.xlu1 %v2513_v17, %s2205_s28  ;;  %s2739_s3 = scalar_lea.vmem %s2696_s5, %s2453_s13 }
 0x105   : > { %794 = vrot.lane.b32.xlu0 %v2513_v17, %s2206_s10  ;;  %s2740_s10 = scalar_lea.vmem %s2697_s6, %s2453_s13 }
 0x10c   : > { %994 = vrot.lane.b32.xlu2 %v2508_v12, %s2207_s24  ;;  %1019 = vrot.lane.b32.xlu1 %v2513_v17, %s2208_s27 }
 0x10d   : > { %996 = vrot.lane.b32.xlu0 %v2508_v12, %s2208_s27 }
 0x114   : > { %1131 = vrot.lane.b32.xlu2 %v2513_v17, %s2209_s22  ;;  %1108 = vrot.lane.b32.xlu1 %v2508_v12, %s2209_s22 }
 0x115   : > { %1017 = vrot.lane.b32.xlu0 %v2513_v17, %s2207_s24 }
 0x11c   : > { %1129 = vrot.lane.b32.xlu1 %v2513_v17, %s2210_s20 }
 0x11d   : > { %1106 = vrot.lane.b32.xlu0 %v2508_v12, %s2210_s20 }
 0x156   : > { %v883_v18 = vpop.permute.xlu2 %882 }
 0x15e   : > { %v906_v23 = vpop.permute.xlu2 %905 }
 0x166   : > { %v995_v28 = vpop.permute.xlu2 %994 }
 0x16e   : > { %v885_v19 = vpop.permute.xlu1 %884  ;;  %v1132_v33 = vpop.permute.xlu2 %1131 }
 0x16f   : > { %v770_v20 = vpop.permute.xlu0 %769  ;;  %v890_v21 = vsel %vm771_vm2, %v885_v19, 0  ;;  %v1137_v36 = vsel %vm771_vm2, %v1132_v33, 0 }
 0x170   : > { %v776_v22 = vsel %vm771_vm2, %v770_v20, 0  ;;  %899 = vmatpush.bf16.xpose.msrb.mxu0 %v890_v21 }
 0x171   : > { %785 = vmatpush.bf16.xpose.msra.mxu1 %v776_v22 }
 0x176   : > { %v908_v24 = vpop.permute.xlu1 %907 }
 0x177   : > { %v795_v25 = vpop.permute.xlu0 %794  ;;  %1748 = vmatmul.msk.bf16.vlgmr.msrb.gmra.mxu0 %vm771_vm2, %v883_v18  ;;  %v913_v26 = vsel %vm771_vm2, %v908_v24, 0 }
 0x178   : > { %1744 = vmatmul.msk.bf16.vlgmr.msra.gmra.mxu1 %vm771_vm2, %v764_v10  ;;  %v800_v27 = vsel %vm771_vm2, %v795_v25, 0 }
 0x179   : > { %809 = vmatpush.bf16.xpose.msra.mxu2 %v800_v27  ;;  %922 = vmatpush.bf16.xpose.msrb.mxu1 %v913_v26 }
 0x17e   : > { %v1020_v29 = vpop.permute.xlu1 %1019 }
 0x17f   : > { %v1025_v30 = vsel %vm771_vm2, %v1020_v29, 0  ;;  %v997_v31 = vpop.permute.xlu0 %996 }
 0x180   : > { %v1002_v32 = vsel %vm771_vm2, %v997_v31, 0  ;;  %1745 = vmatmul.msk.bf16.vlgmr.msra.gmra.mxu2 %vm771_vm2, %v765_v15 }
 0x181   : > { %1034 = vmatpush.bf16.xpose.msra.mxu1 %v1025_v30  ;;  %1011 = vmatpush.bf16.xpose.msra.mxu0 %v1002_v32 }
 0x186   : > { %v1109_v34 = vpop.permute.xlu1 %1108 }
 0x187   : > { %v1114_v35 = vsel %vm771_vm2, %v1109_v34, 0  ;;  %v1018_v37 = vpop.permute.xlu0 %1017 }
 0x188   : > { %1749 = vmatmul.msk.bf16.vlgmr.msrb.gmra.mxu1 %vm771_vm2, %v906_v23  ;;  %1752 = vmatmul.msk.bf16.vlgmr.msra.gmra.mxu0 %vm771_vm2, %v995_v28 }
 0x189   : > { %1146 = vmatpush.bf16.xpose.msrb.mxu1 %v1137_v36  ;;  %1123 = vmatpush.bf16.xpose.msrb.mxu0 %v1114_v35 }
 0x18e   : > { %v1130_v39 = vpop.permute.xlu1 %1129 }
 0x18f   : > { %v1107_v38 = vpop.permute.xlu0 %1106 }
 0x198   : > { %1753 = vmatmul.msk.bf16.vlgmr.msra.gmra.mxu1 %vm771_vm2, %v1018_v37  ;;  %1756 = vmatmul.msk.bf16.vlgmr.msrb.gmra.mxu0 %vm771_vm2, %v1107_v38 }
 0x1a8   : > { %1757 = vmatmul.msk.bf16.vlgmr.msrb.gmra.mxu1 %vm771_vm2, %v1130_v39 }
 0x1f4   : > { %v901_v41 = vpop.f32.mrf.mxu0 }
 0x1f5   : > { %v787_v42 = vpop.f32.mrf.mxu1  ;;  %v902_v43 = vadd.f32 %v901_v41, %v763_v40 }
 0x1f6   : > { %v788_v44 = vadd.f32 %v787_v42, %v763_v40 }
 0x1f7   : > { %v928_v45 = vsel %vm771_vm2, %v902_v43, -inf }
 0x1f8   : > { %929 = vmax.xlane.f32.xlu1 %v928_v45  ;;  %v815_v46 = vsel %vm771_vm2, %v788_v44, -inf }
 0x1f9   : > { %816 = vmax.xlane.f32.xlu2 %v815_v46 }
 0x1fc   : > { %v903_v47 = vpop.f32.mrf.mxu0 }
 0x1fd   : > { %v789_v48 = vpop.f32.mrf.mxu1 }
 0x203   : > { %v811_v49 = vpop.f32.mrf.mxu2 }
 0x204   : > { %v812_v50 = vadd.f32 %v811_v49, %v763_v40 }
 0x205   : > { %v924_v51 = vpop.f32.mrf.mxu1  ;;  %v1013_v52 = vpop.f32.mrf.mxu0 }
 0x206   : > { %v925_v53 = vadd.f32 %v924_v51, %v763_v40  ;;  %v2544_v54 = vadd.f32 %v1013_v52, %v763_v40  ;;  %v818_v55 = vsel %vm771_vm2, %v812_v50, -inf }
 0x207   : > { %819 = vmax.xlane.f32.xlu0 %v818_v55 }
 0x208   : > { %v931_v56 = vsel %vm771_vm2, %v925_v53, -inf  ;;  %v1040_v9 = vsel %vm771_vm2, %v2544_v54, -inf }
 0x209   : > { %932 = vmax.xlane.f32.xlu2 %v931_v56 }
 0x20b   : > { %v813_v57 = vpop.f32.mrf.mxu2 }
 0x20d   : > { %v926_v58 = vpop.f32.mrf.mxu1  ;;  %v1015_v59 = vpop.f32.mrf.mxu0 }
 0x211   : > { %861 = vrot.lane.b32.xlu1 %v2513_v17, %s2211_s23 }
 0x215   : > { %v1036_v60 = vpop.f32.mrf.mxu1  ;;  %v1125_v61 = vpop.f32.mrf.mxu0 }
 0x216   : > { %v1037_v3 = vadd.f32 %v1036_v60, %v763_v40  ;;  %v1126_v8 = vadd.f32 %v1125_v61, %v763_v40 }
 0x218   : > { %v1043_v7 = vsel %vm771_vm2, %v1037_v3, -inf  ;;  %v1152_v10 = vsel %vm771_vm2, %v1126_v8, -inf }
 0x219   : > { %973 = vrot.lane.b32.xlu1 %v2513_v17, %s2212_s11 }
 0x21b   : > { %952 = vrot.lane.b32.xlu0 %v2508_v12, %s2212_s11 }
 0x21d   : > { %v1038_v62 = vpop.f32.mrf.mxu1  ;;  %v1127_v63 = vpop.f32.mrf.mxu0 }
 0x221   : > { %839 = vrot.lane.b32.xlu2 %v2508_v12, %s2211_s23 }
 0x225   : > { %v1148_v0 = vpop.f32.mrf.mxu1 }
 0x226   : > { %v1149_v2 = vadd.f32 %v1148_v0, %v763_v40 }
 0x228   : > { %v1155_v6 = vsel %vm771_vm2, %v1149_v2, -inf }
 0x22d   : > { %v1150_v1 = vpop.f32.mrf.mxu1 }
 0x243   : > { %1156 = vmax.xlane.f32.xlu1 %v1155_v6 }
 0x245   : > { %1044 = vmax.xlane.f32.xlu0 %v1043_v7 }
 0x24a   : > { %1041 = vmax.xlane.f32.xlu2 %v1040_v9 }
 0x24d   : > { %1153 = vmax.xlane.f32.xlu0 %v1152_v10 }
 0x26b   : > { %v930_v11 = vpop.xlane.xlu1 %929 }
 0x26c   : > { %v934_v13 = vsub.f32 %v902_v43, %v930_v11  ;;  %v817_v14 = vpop.xlane.xlu2 %816 }
 0x26d   : > { %v821_v15 = vsub.f32 %v788_v44, %v817_v14 }
 0x26e   : > { %v936_v16 = vmul.f32 1.442695, %v934_v13 }
 0x26f   : > { %v823_v18 = vmul.f32 1.442695, %v821_v15 }
 0x270   : > { %1932 = vpow2.f32 %v936_v16 }
 0x271   : > { %1934 = vpow2.f32 %v823_v18 }
 0x276   : > { %v2559_v19 = vpop.eup %1932 }
 0x277   : > { %v2561_v20 = vpop.eup %1934  ;;  %v940_v21 = vsel %vm771_vm2, %v2559_v19, 0.0 }
 0x278   : > { %v827_v22 = vsel %vm771_vm2, %v2561_v20, 0.0  ;;  %941 = vadd.xlane.f32.xlu0 %v940_v21 }
 0x279   : > { %828 = vadd.xlane.f32.xlu1 %v827_v22 }
 0x27a   : > { %v820_v23 = vpop.xlane.xlu0 %819 }
 0x27b   : > { %v822_v24 = vsub.f32 %v812_v50, %v820_v23 }
 0x27c   : > { %v933_v25 = vpop.xlane.xlu2 %932 }
 0x27d   : > { %v825_v26 = vmul.f32 1.442695, %v822_v24  ;;  %v935_v27 = vsub.f32 %v925_v53, %v933_v25 }
 0x27f   : > { %1936 = vpow2.f32 %v825_v26  ;;  %v938_v28 = vmul.f32 1.442695, %v935_v27 }
 0x281   : > { %1938 = vpow2.f32 %v938_v28 }
 0x283   : > { %v862_v29 = vpop.permute.xlu1 %861 }
 0x284   : > { %v840_v30 = vpop.permute.xlu2 %839  ;;  %v867_v31 = vsel %vm844_vm3, %v862_v29, 0 }
 0x285   : > { %v2568_v32 = vpop.eup %1936  ;;  %v846_v33 = vsel %vm844_vm3, %v840_v30, 0 }
 0x286   : > { %855 = vmatpush.bf16.msra.mxu3 %v846_v33  ;;  %v830_v34 = vsel %vm771_vm2, %v2568_v32, 0.0 }
 0x287   : > { %v2573_v35 = vpop.eup %1938  ;;  %831 = vadd.xlane.f32.xlu0 %v830_v34 }
 0x288   : > { %v943_v36 = vsel %vm771_vm2, %v2573_v35, 0.0 }
 0x289   : > { %944 = vadd.xlane.f32.xlu2 %v943_v36 }
 0x28a   : > { %876 = vmatpush.bf16.msrb.mxu3 %v867_v31 }
 0x28b   : > { %v974_v39 = vpop.permute.xlu1 %973 }
 0x28c   : > { %v979_v6 = vsel %vm844_vm3, %v974_v39, 0 }
 0x28d   : > { %v953_v37 = vpop.permute.xlu0 %952 }
 0x28e   : > { %v958_v38 = vsel %vm844_vm3, %v953_v37, 0 }
 0x28f   : > { %967 = vmatpush.bf16.msrb.mxu2 %v958_v38 }
 0x292   : > { %1085 = vrot.lane.b32.xlu1 %v2513_v17, %s2213_s26 }
 0x2a1   : > { %1064 = vrot.lane.b32.xlu2 %v2508_v12, %s2213_s26 }
 0x2b6   : > { %v1157_v40 = vpop.xlane.xlu1 %1156 }
 0x2b7   : > { %v1159_v41 = vsub.f32 %v1149_v2, %v1157_v40 }
 0x2b8   : > { %v1045_v42 = vpop.xlane.xlu0 %1044 }
 0x2b9   : > { %v1047_v43 = vsub.f32 %v1037_v3, %v1045_v42  ;;  %v1162_v45 = vmul.f32 1.442695, %v1159_v41 }
 0x2bb   : > { %v1050_v44 = vmul.f32 1.442695, %v1047_v43 }
 0x2bd   : > { %1940 = vpow2.f32 %v1050_v44  ;;  %v1042_v46 = vpop.xlane.xlu2 %1041 }
 0x2be   : > { %v1046_v47 = vsub.f32 %v2544_v54, %v1042_v46  ;;  %1942 = vpow2.f32 %v1162_v45 }
 0x2c0   : > { %v1048_v48 = vmul.f32 1.442695, %v1046_v47  ;;  %v1154_v49 = vpop.xlane.xlu0 %1153 }
 0x2c1   : > { %v1158_v50 = vsub.f32 %v1126_v8, %v1154_v49 }
 0x2c2   : > { %1944 = vpow2.f32 %v1048_v48 }
 0x2c3   : > { %v1941_v51 = vpop.eup %1940  ;;  %v1160_v52 = vmul.f32 1.442695, %v1158_v50 }
 0x2c4   : > { %v1055_v53 = vsel %vm771_vm2, %v1941_v51, 0.0  ;;  %v2582_v55 = vpop.eup %1942 }
 0x2c5   : > { %1946 = vpow2.f32 %v1160_v52  ;;  %1056 = vadd.xlane.f32.xlu0 %v1055_v53  ;;  %v1167_v58 = vsel %vm771_vm2, %v2582_v55, 0.0 }
 0x2c8   : > { %v1945_v56 = vpop.eup %1944 }
 0x2c9   : > { %v1052_v57 = vsel %vm771_vm2, %v1945_v56, 0.0 }
 0x2ca   : > { %1053 = vadd.xlane.f32.xlu1 %v1052_v57  ;;  %1168 = vadd.xlane.f32.xlu2 %v1167_v58 }
 0x2cb   : > { %v1947_v54 = vpop.eup %1946 }
 0x2cc   : > { %v1164_v59 = vsel %vm771_vm2, %v1947_v54, 0.0 }
 0x2cd   : > { %1165 = vadd.xlane.f32.xlu0 %v1164_v59  ;;  %v1806_v59 = vld [vmem:[%s2466_s14] sm:$0xff] }
 0x2e1   : > { %1176 = vrot.lane.b32.xlu0 %v2508_v12, %s2214_s29 }
 0x2e3   : > { %1197 = vrot.lane.b32.xlu1 %v2513_v17, %s2214_s29 }
 0x2eb   : > { %v942_v60 = vpop.xlane.xlu0 %941 }
 0x2ec   : > { %v829_v61 = vpop.xlane.xlu1 %828  ;;  %1948 = vrcp.f32 %v942_v60 }
 0x2ed   : > { %1950 = vrcp.f32 %v829_v61 }
 0x2f2   : > { %v1949_v62 = vpop.eup %1948 }
 0x2f3   : > { %v1951_v63 = vpop.eup %1950  ;;  %v948_v0 = vmul.f32 %v1949_v62, %v2559_v19 }
 0x2f4   : > { %v835_v1 = vmul.f32 %v1951_v63, %v2561_v20 }
 0x2f5   : > { %v950_v2 = vpack.c.bf16 %v948_v0, %v948_v0 }
 0x2f6   : > { %v837_v3 = vpack.c.bf16 %v835_v1, %v835_v1 }
 0x2f7   : > { %1750 = vmatmul.msk.bf16.vlgmr.msrb.gmra.mxu2 %vm771_vm2, %v950_v2 }
 0x2f8   : > { %1746 = vmatmul.msk.bf16.vlgmr.msra.gmra.mxu3 %vm771_vm2, %v837_v3 }
 0x2f9   : > { %988 = vmatpush.bf16.msra.mxu3 %v979_v6 }
 0x2fa   : > { %v832_v12 = vpop.xlane.xlu0 %831 }
 0x2fb   : > { %1952 = vrcp.f32 %v832_v12 }
 0x2fc   : > { %v945_v17 = vpop.xlane.xlu2 %944 }
 0x2fd   : > { %1954 = vrcp.f32 %v945_v17 }
 0x301   : > { %v1953_v7 = vpop.eup %1952 }
 0x302   : > { %v836_v8 = vmul.f32 %v1953_v7, %v2568_v32 }
 0x303   : > { %v1955_v15 = vpop.eup %1954 }
 0x304   : > { %v1065_v9 = vpop.permute.xlu2 %1064  ;;  %v1086_v11 = vpop.permute.xlu1 %1085  ;;  %v838_v13 = vpack.c.bf16 %v836_v8, %v836_v8  ;;  %v949_v16 = vmul.f32 %v1955_v15, %v2573_v35 }
 0x305   : > { %v1070_v10 = vsel %vm844_vm3, %v1065_v9, 0  ;;  %v1091_v14 = vsel %vm844_vm3, %v1086_v11, 0 }
 0x306   : > { %1079 = vmatpush.bf16.msra.mxu2 %v1070_v10  ;;  %v951_v18 = vpack.c.bf16 %v949_v16, %v949_v16 }
 0x308   : > { %1747 = vmatmul.msk.bf16.vlgmr.msrb.gmra.mxu3 %vm771_vm2, %v838_v13  ;;  %v1925_v13 = vld [vmem:[%s2739_s3] ss:$0 sm:$0xff] }
 0x309   : > { %1100 = vmatpush.bf16.msrb.mxu3 %v1091_v14 }
 0x318   : > { %1751 = vmatmul.msk.bf16.vlgmr.msra.gmra.mxu3 %vm771_vm2, %v951_v18 }
 0x338   : > { %v1057_v19 = vpop.xlane.xlu0 %1056 }
 0x339   : > { %1956 = vrcp.f32 %v1057_v19 }
 0x33d   : > { %v1054_v20 = vpop.xlane.xlu1 %1053  ;;  %v1169_v26 = vpop.xlane.xlu2 %1168 }
 0x33e   : > { %1958 = vrcp.f32 %v1054_v20 }
 0x33f   : > { %v1957_v21 = vpop.eup %1956  ;;  %1960 = vrcp.f32 %v1169_v26 }
 0x340   : > { %v1061_v22 = vmul.f32 %v1957_v21, %v1941_v51  ;;  %v1166_v28 = vpop.xlane.xlu0 %1165 }
 0x341   : > { %1962 = vrcp.f32 %v1166_v28 }
 0x342   : > { %v1063_v23 = vpack.c.bf16 %v1061_v22, %v1061_v22 }
 0x344   : > { %1755 = vmatmul.msk.bf16.vlgmr.msrb.gmra.mxu3 %vm771_vm2, %v1063_v23  ;;  %v1959_v24 = vpop.eup %1958  ;;  %v2218_v23 = vmov 32.0  }
 0x345   : > { %v1060_v25 = vmul.f32 %v1959_v24, %v1945_v56  ;;  %v1961_v29 = vpop.eup %1960  ;;  %1964 = vrcp.f32 %v2218_v23 }
 0x346   : > { %v1173_v32 = vmul.f32 %v1961_v29, %v2582_v55 }
 0x347   : > { %v1062_v27 = vpack.c.bf16 %v1060_v25, %v1060_v25  ;;  %v1963_v30 = vpop.eup %1962 }
 0x348   : > { %v1172_v33 = vmul.f32 %v1963_v30, %v1947_v54  ;;  %v1175_v37 = vpack.c.bf16 %v1173_v32, %v1173_v32  ;;  %v1807_v54 = vld [vmem:[%s2466_s14 + $0x8] sm:$0xff] }
 0x349   : > { %1754 = vmatmul.msk.bf16.vlgmr.msra.gmra.mxu2 %vm771_vm2, %v1062_v27  ;;  %1280 = vmatpush.bf16.msra.mxu0 %v1807_v54  ;;  %v1926_v54 = vld [vmem:[%s2740_s10] ss:$0 sm:$0xff] }
 0x34a   : > { %v1174_v38 = vpack.c.bf16 %v1172_v33, %v1172_v33 }
 0x34b   : > { %v1965_v24 = vpop.eup %1964 }
 0x34c   : > { %v1299_v25 = vmul.f32 32.0, %v1965_v24  ;;  %vm1303_vm6 = vweird.f32 %v1965_v24 }
 0x34d   : > { %1281 = vmatpush.bf16.msra.mxu0 %v1806_v59 }
 0x34e   : > { %v1300_v26 = vsub.f32 1.0, %v1299_v25 }
 0x350   : > { %v1301_v27 = vmul.f32 %v1965_v24, %v1300_v26 }
 0x352   : > { %v1302_v28 = vadd.f32 %v1965_v24, %v1301_v27 }
 0x353   : > { %v1177_v31 = vpop.permute.xlu0 %1176 }
 0x354   : > { %v1182_v34 = vsel %vm844_vm3, %v1177_v31, 0 }
 0x355   : > { %v1198_v35 = vpop.permute.xlu1 %1197  ;;  %1191 = vmatpush.bf16.msrb.mxu2 %v1182_v34 }
 0x356   : > { %v1203_v36 = vsel %vm844_vm3, %v1198_v35, 0 }
 0x357   : > { %1212 = vmatpush.bf16.msra.mxu3 %v1203_v36 }
 0x359   : > { %1758 = vmatmul.msk.bf16.vlgmr.msrb.gmra.mxu2 %vm771_vm2, %v1174_v38  ;;  %v1809_v38 = vld [vmem:[%s2479_s18 + $0x8] sm:$0xff] }
 0x35a   : > { %1759 = vmatmul.msk.bf16.vlgmr.msra.gmra.mxu3 %vm771_vm2, %v1175_v37  ;;  %1383 = vmatpush.bf16.msra.mxu1 %v1809_v38 }
 0x37a   : > { %v969_v39 = vpop.f32.mrf.mxu2 }
 0x37b   : > { %v857_v40 = vpop.f32.mrf.mxu3 }
 0x382   : > { %v971_v41 = vpop.f32.mrf.mxu2 }
 0x383   : > { %v859_v42 = vpop.f32.mrf.mxu3 }
 0x384   : > { %v1808_v42 = vld [vmem:[%s2479_s18] sm:$0xff] }
 0x385   : > { %1384 = vmatpush.bf16.msra.mxu1 %v1808_v42 }
 0x38b   : > { %v878_v43 = vpop.f32.mrf.mxu3 }
 0x393   : > { %v880_v44 = vpop.f32.mrf.mxu3 }
 0x39b   : > { %v990_v45 = vpop.f32.mrf.mxu3 }
 0x39c   : > { %v1909_v46 = vpack.i.bf16 %v990_v45, %v969_v39 }
 0x39e   : > { %1910 = vrot.lane.b32.xlu0 %v1909_v46, %s2215_s12 }
 0x3a3   : > { %v992_v47 = vpop.f32.mrf.mxu3 }
 0x3c7   : > { %v1102_v48 = vpop.f32.mrf.mxu3 }
 0x3cc   : > { %v1081_v49 = vpop.f32.mrf.mxu2 }
 0x3cd   : > { %v1914_v50 = vpack.i.bf16 %v1102_v48, %v1081_v49 }
 0x3cf   : > { %v1104_v51 = vpop.f32.mrf.mxu3  ;;  %1915 = vrot.lane.b32.xlu1 %v1914_v50, %s2216_s21 }
 0x3d4   : > { %v1083_v52 = vpop.f32.mrf.mxu2 }
 0x3dc   : > { %v1193_v53 = vpop.f32.mrf.mxu2 }
 0x3dd   : > { %v1214_v55 = vpop.f32.mrf.mxu3 }
 0x3de   : > { %v1919_v56 = vpack.i.bf16 %v1214_v55, %v1193_v53 }
 0x3e0   : > { %1920 = vrot.lane.b32.xlu0 %v1919_v56, %s2217_s25 }
 0x3e4   : > { %v1195_v57 = vpop.f32.mrf.mxu2 }
 0x3e5   : > { %v1216_v58 = vpop.f32.mrf.mxu3 }
 0x410   : > { %v1911_v60 = vpop.permute.xlu0 %1910 }
 0x411   : > { %v1913_v62 = vunpack.i.h.bf16 %v1911_v60  ;;  %v1912_v63 = vunpack.i.l.bf16 %v1911_v60 }
 0x413   : > { %v1243_v3 = vsel %vm771_vm2, %v878_v43, %v1913_v62  ;;  %v1242_v6 = vsel %vm771_vm2, %v857_v40, %v1912_v63  ;;  %v1927_v62 = vld [vmem:[%s585_s19] ss:$0 sm:$0xff] }
 0x441   : > { %v1916_v61 = vpop.permute.xlu1 %1915 }
 0x442   : > { %v1918_v0 = vunpack.i.h.bf16 %v1916_v61  ;;  %v1917_v1 = vunpack.i.l.bf16 %v1916_v61 }
 0x444   : > { %v1245_v7 = vsel %vm1244_vm4, %v1242_v6, %v1917_v1  ;;  %v1246_v8 = vsel %vm1244_vm4, %v1243_v3, %v1918_v0 }
 0x452   : > { %v1921_v2 = vpop.permute.xlu0 %1920 }
 0x453   : > { %v1923_v12 = vunpack.i.h.bf16 %v1921_v2  ;;  %v1922_v17 = vunpack.i.l.bf16 %v1921_v2 }
 0x455   : > { %v1248_v9 = vsel %vm1247_vm5, %v1245_v7, %v1922_v17  ;;  %v1249_v10 = vsel %vm1247_vm5, %v1246_v8, %v1923_v12  ;;  %v1813_v12 = vld [vmem:[%s2493_s7 + $0x18] sm:$0xff]  ;;  %v1812_v17 = vld [vmem:[%s2493_s7 + $0x10] sm:$0xff]  ;;  %v1811_v7 = vld [vmem:[%s2493_s7 + $0x8] sm:$0xff] }
 0x456   : > { %v1250_v11 = vpack.c.bf16 %v1249_v10, %v1248_v9  ;;  %1438 = vmatpush.bf16.msra.mxu2 %v1813_v12  ;;  %v1810_v8 = vld [vmem:[%s2493_s7] sm:$0xff] }
 0x457   : > { %v1928_v10 = vld [vmem:[%s703_s1] ss:$0 sm:$0xff] }
 0x458   : > { %1768 = vmatmul.msk.bf16.vlgmr.msra.gmra.mxu0 %vm745_vm1, %v1250_v11 }
 0x45a   : > { %1439 = vmatpush.bf16.msra.mxu2 %v1812_v17 }
 0x45e   : > { %1440 = vmatpush.bf16.msra.mxu2 %v1811_v7 }
 0x462   : > { %1441 = vmatpush.bf16.msra.mxu2 %v1810_v8 }
 0x4d5   : > { %v1283_v14 = vpop.f32.mrf.mxu0 }
 0x4d6   : > { %v1284_v15 = vadd.f32 %v1925_v13, %v1283_v14 }
 0x4d8   : > { %v1288_v16 = vadd.f32 %v1284_v15, %v2499_v4  ;;  %v2622_v4 = vsel %vm1303_vm6, %v1965_v24, %v1302_v28 }
 0x4da   : > { %v1292_v18 = vsel %vm745_vm1, %v1288_v16, 0.0 }
 0x4db   : > { %1293 = vadd.xlane.f32.xlu1 %v1292_v18 }
 0x4dd   : > { %v1285_v19 = vpop.f32.mrf.mxu0 }
 0x4de   : > { %v1286_v20 = vadd.f32 %v1925_v13, %v1285_v19  ;;  %v1929_v19 = vld [vmem:[%s711_s4] ss:$0 sm:$0xff] }
 0x4e0   : > { %v1289_v21 = vadd.f32 %v1286_v20, %v2501_v5 }
 0x4e2   : > { %v1295_v22 = vsel %vm745_vm1, %v1289_v21, 0.0 }
 0x4e3   : > { %1296 = vadd.xlane.f32.xlu2 %v1295_v22 }
 0x54e   : > { %v1294_v29 = vpop.xlane.xlu1 %1293 }
 0x54f   : > { %v1305_v30 = vmul.f32 %v2622_v4, %v1294_v29 }
 0x551   : > { %v1307_v31 = vsub.f32 %v1288_v16, %v1305_v30 }
 0x553   : > { %v1309_v5 = vmul.f32 %v1307_v31, %v1307_v31 }
 0x555   : > { %v1311_v32 = vsel %vm745_vm1, %v1309_v5, 0.0 }
 0x556   : > { %v1297_v33 = vpop.xlane.xlu2 %1296  ;;  %1312 = vadd.xlane.f32.xlu0 %v1311_v32 }
 0x557   : > { %v1306_v34 = vmul.f32 %v2622_v4, %v1297_v33 }
 0x559   : > { %v1308_v35 = vsub.f32 %v1289_v21, %v1306_v34 }
 0x55b   : > { %v1310_v36 = vmul.f32 %v1308_v35, %v1308_v35 }
 0x55d   : > { %v1314_v37 = vsel %vm745_vm1, %v1310_v36, 0.0 }
 0x55e   : > { %1315 = vadd.xlane.f32.xlu2 %v1314_v37 }
 0x5c9   : > { %v1313_v39 = vpop.xlane.xlu0 %1312 }
 0x5ca   : > { %v1317_v40 = vmul.f32 %v1313_v39, %v2622_v4 }
 0x5cc   : > { %v1319_v41 = vadd.f32 1e-05, %v1317_v40 }
 0x5ce   : > { %1966 = vrsqrt.f32 %v1319_v41  ;;  %vm1327_vm8 = vweird.f32 %v1319_v41 }
 0x5d1   : > { %v1316_v43 = vpop.xlane.xlu2 %1315 }
 0x5d2   : > { %v1318_v44 = vmul.f32 %v1316_v43, %v2622_v4 }
 0x5d4   : > { %v1967_v45 = vpop.eup %1966  ;;  %v1320_v46 = vadd.f32 1e-05, %v1318_v44 }
 0x5d5   : > { %v1322_v47 = vmul.f32 %v1967_v45, %v1319_v41  ;;  %vm1328_vm7 = vweird.f32 %v1967_v45 }
 0x5d6   : > { %1968 = vrsqrt.f32 %v1320_v46  ;;  %vm1329_vm9 = vmor %vm1327_vm8, %vm1328_vm7  ;;  %vm1337_vm11 = vweird.f32 %v1320_v46 }
 0x5d7   : > { %v1323_v48 = vmul.f32 %v1967_v45, %v1322_v47 }
 0x5d9   : > { %v1324_v49 = vmul.f32 0.5, %v1323_v48 }
 0x5db   : > { %v1325_v50 = vsub.f32 1.5, %v1324_v49 }
 0x5dc   : > { %v1969_v51 = vpop.eup %1968 }
 0x5dd   : > { %v1326_v52 = vmul.f32 %v1967_v45, %v1325_v50  ;;  %v1332_v53 = vmul.f32 %v1969_v51, %v1320_v46  ;;  %vm1338_vm10 = vweird.f32 %v1969_v51 }
 0x5de   : > { %vm1339_vm12 = vmor %vm1337_vm11, %vm1338_vm10 }
 0x5df   : > { %v1333_v55 = vmul.f32 %v1969_v51, %v1332_v53  ;;  %v1330_v56 = vsel %vm1329_vm9, %v1967_v45, %v1326_v52  ;;  %v1931_v53 = vld [vmem:[%s594_s15] ss:$0 sm:$0xff] }
 0x5e0   : > { %v1341_v59 = vmul.f32 %v1330_v56, %v1307_v31 }
 0x5e1   : > { %v1334_v57 = vmul.f32 0.5, %v1333_v55 }
 0x5e2   : > { %v1346_v63 = vmul.f32 %v1926_v54, %v1341_v59 }
 0x5e3   : > { %v1335_v58 = vsub.f32 1.5, %v1334_v57 }
 0x5e4   : > { %v1351_v2 = vadd.f32 %v1927_v62, %v1346_v63 }
 0x5e5   : > { %v1336_v60 = vmul.f32 %v1969_v51, %v1335_v58 }
 0x5e7   : > { %v1340_v61 = vsel %vm1339_vm12, %v1969_v51, %v1336_v60  ;;  %v1930_v51 = vld [vmem:[%s695_s0] ss:$0 sm:$0xff] }
 0x5e8   : > { %v1342_v0 = vmul.f32 %v1340_v61, %v1308_v35 }
 0x5ea   : > { %v1347_v1 = vmul.f32 %v1926_v54, %v1342_v0 }
 0x5ec   : > { %v1352_v3 = vadd.f32 %v1927_v62, %v1347_v1 }
 0x5ee   : > { %v1353_v6 = vpack.c.bf16 %v1352_v3, %v1351_v2 }
 0x5f0   : > { %1777 = vmatmul.msk.bf16.vlgmr.msra.gmra.mxu1 %vm745_vm1, %v1353_v6 }
 0x66d   : > { %v1386_v9 = vpop.f32.mrf.mxu1 }
 0x66e   : > { %v1387_v11 = vadd.f32 %v1928_v10, %v1386_v9 }
 0x670   : > { %v1391_v15 = vmax.f32 %v1387_v11, 0.0 }
 0x675   : > { %v1388_v13 = vpop.f32.mrf.mxu1 }
 0x676   : > { %v1389_v14 = vadd.f32 %v1928_v10, %v1388_v13 }
 0x678   : > { %v1392_v16 = vmax.f32 %v1389_v14, 0.0 }
 0x67a   : > { %v1393_v18 = vpack.c.bf16 %v1392_v16, %v1391_v15 }
 0x67c   : > { %1794 = vmatmul.msk.bf16.vlgmr.msra.gmra.mxu2 %vm1430_vm13, %v1393_v18 }
 0x6ff   : > { %v1443_v20 = vpop.f32.mrf.mxu2 }
 0x700   : > { %v1444_v21 = vadd.f32 %v1929_v19, %v1443_v20 }
 0x702   : > { %v1448_v22 = vadd.f32 %v1444_v21, %v1351_v2 }
 0x704   : > { %v1452_v23 = vsel %vm745_vm1, %v1448_v22, 0.0 }
 0x705   : > { %1453 = vadd.xlane.f32.xlu2 %v1452_v23 }
 0x707   : > { %v1445_v24 = vpop.f32.mrf.mxu2 }
 0x708   : > { %v1446_v25 = vadd.f32 %v1929_v19, %v1445_v24 }
 0x70a   : > { %v1449_v26 = vadd.f32 %v1446_v25, %v1352_v3 }
 0x70c   : > { %v1455_v27 = vsel %vm745_vm1, %v1449_v26, 0.0 }
 0x70d   : > { %1456 = vadd.xlane.f32.xlu2 %v1455_v27 }
 0x778   : > { %v1454_v28 = vpop.xlane.xlu2 %1453 }
 0x779   : > { %v1458_v29 = vmul.f32 %v1454_v28, %v2622_v4 }
 0x77b   : > { %v1460_v30 = vsub.f32 %v1448_v22, %v1458_v29 }
 0x77d   : > { %v1462_v31 = vmul.f32 %v1460_v30, %v1460_v30 }
 0x77f   : > { %v1464_v5 = vsel %vm745_vm1, %v1462_v31, 0.0 }
 0x780   : > { %1465 = vadd.xlane.f32.xlu2 %v1464_v5  ;;  %v1457_v32 = vpop.xlane.xlu2 %1456 }
 0x781   : > { %v1459_v33 = vmul.f32 %v1457_v32, %v2622_v4 }
 0x783   : > { %v1461_v34 = vsub.f32 %v1449_v26, %v1459_v33 }
 0x785   : > { %v1463_v35 = vmul.f32 %v1461_v34, %v1461_v34 }
 0x787   : > { %v1467_v36 = vsel %vm745_vm1, %v1463_v35, 0.0 }
 0x788   : > { %1468 = vadd.xlane.f32.xlu1 %v1467_v36 }
 0x7f3   : > { %v1466_v37 = vpop.xlane.xlu2 %1465 }
 0x7f4   : > { %v1470_v38 = vmul.f32 %v1466_v37, %v2622_v4 }
 0x7f6   : > { %v1472_v39 = vadd.f32 1e-05, %v1470_v38 }
 0x7f8   : > { %1970 = vrsqrt.f32 %v1472_v39  ;;  %vm1480_vm15 = vweird.f32 %v1472_v39 }
 0x7fb   : > { %v1469_v40 = vpop.xlane.xlu1 %1468 }
 0x7fc   : > { %v1471_v41 = vmul.f32 %v1469_v40, %v2622_v4 }
 0x7fe   : > { %v1971_v42 = vpop.eup %1970  ;;  %v1473_v43 = vadd.f32 1e-05, %v1471_v41 }
 0x7ff   : > { %v1475_v44 = vmul.f32 %v1971_v42, %v1472_v39  ;;  %vm1481_vm14 = vweird.f32 %v1971_v42 }
 0x800   : > { %1972 = vrsqrt.f32 %v1473_v43  ;;  %vm1482_vm0 = vmor %vm1480_vm15, %vm1481_vm14  ;;  %vm1490_vm3 = vweird.f32 %v1473_v43 }
 0x801   : > { %v1476_v45 = vmul.f32 %v1971_v42, %v1475_v44 }
 0x803   : > { %v1477_v46 = vmul.f32 0.5, %v1476_v45 }
 0x805   : > { %v1478_v47 = vsub.f32 1.5, %v1477_v46 }
 0x806   : > { %v1973_v48 = vpop.eup %1972 }
 0x807   : > { %v1479_v49 = vmul.f32 %v1971_v42, %v1478_v47  ;;  %v1485_v50 = vmul.f32 %v1973_v48, %v1473_v43  ;;  %vm1491_vm2 = vweird.f32 %v1973_v48 }
 0x808   : > { %vm1492_vm4 = vmor %vm1490_vm3, %vm1491_vm2 }
 0x809   : > { %v1483_v4 = vsel %vm1482_vm0, %v1971_v42, %v1479_v49  ;;  %v1486_v52 = vmul.f32 %v1973_v48, %v1485_v50 }
 0x80a   : > { %v1494_v55 = vmul.f32 %v1483_v4, %v1460_v30 }
 0x80b   : > { %v1487_v56 = vmul.f32 0.5, %v1486_v52 }
 0x80c   : > { %v1499_v57 = vmul.f32 %v1930_v51, %v1494_v55 }
 0x80d   : > { %v1488_v58 = vsub.f32 1.5, %v1487_v56 }
 0x80e   : > { %v1504_v54 = vadd.f32 %v1931_v53, %v1499_v57 }
 0x80f   : > { %v1489_v59 = vmul.f32 %v1973_v48, %v1488_v58 }
 0x810   : > { %1506 = vst.msk [vmem:[#allocation2] sm:$0xff] %vm745_vm1, %v1504_v54 }
 0x811   : > { %v1493_v60 = vsel %vm1492_vm4, %v1973_v48, %v1489_v59 }
 0x812   : > { %v1495_v61 = vmul.f32 %v1493_v60, %v1461_v34 }
 0x814   : > { %v1500_v62 = vmul.f32 %v1930_v51, %v1495_v61  ;;  %1511 = sbr.rel (%p1795_p5) target bundleno = 2077 (0x81d), region = 104 }
 0x816   : > { %v1505_v63 = vadd.f32 %v1931_v53, %v1500_v62 }
 0x818   : > { %1507 = vst.msk [vmem:[#allocation2 + $0x8] sm:$0xff] %vm745_vm1, %v1505_v63 }
 0x819   : > { %v1512_v0 = vpack.c.bf16 %v1504_v54, %v1504_v54  ;;  %vm1514_vm5 = vcmask 257024   ;;  %v1513_v1 = vpack.c.bf16 %v1505_v63, %v1505_v63 }
 0x81b   : > { %1515 = vst.msk [vmem:[#allocation11] sm:$0xf] %vm1514_vm5, %v1512_v0 }
 0x81c   : > { %1516 = vst.msk [vmem:[#allocation11 + $0x4] sm:$0xf] %vm1514_vm5, %v1513_v1 }
 0x81d PF: > { %p1854_p0 = scmp.eq.s32.totalorder %s2315_s17, 1  ;;  %s2219_s7 = smov [#allocation11]  }
 0x81e   : > { %s1522_s16 = sshll.u32 %s2219_s7, 4  ;;  %s2743_s15 = sld [smem:[#allocation29_spill]]  ;;  %s1523_s16 = int_to_ptr.vmem [resolvable:$true] %s1522_s16 }
 0x81f   : > { %s2220_s29 = smov 4  }
 0x824   : > { %s1524_s26 = sshll.u32 %s2743_s15, 4  ;;  %s1525_s26 = int_to_ptr.hbm [resolvable:$true] %s1524_s26 }
 0x825   : > { %1829 = dma.vmem_to_hbm [thread:$0]  (%p1854_p0), %s1523_s16, 128, %s1525_s26, [#allocation5], %s2211_s23, %s2211_s23, %s2220_s29  }
 0x826   : > { %2181 = dma.done.wait (%p1854_p0), [#allocation5], 128  }
 0x827   : > { %2183 = vsyncadd (%p1854_p0), [#allocation5], 4294967168 }
 0x828 PF: > { %s2744_s16 = sld [smem:[#allocation17_spill]]  ;;  %s2747_s29 = smov %s2190_s30 }
 0x829   : > { %s2745_s12 = sld [smem:[#allocation16_spill]] }
 0x82a   : > { %s2746_s15 = sld [smem:[#allocation18_spill]] }
 0x82e   : > { %p24_p3 = scmp.ge.s32.totalorder %s2744_s16, 4  }
 0x82f   : > { %s2748_s30 = smov %s2745_s12 }
 0x830   :  { %26 = sbr.rel (!%p24_p3) target bundleno = 16 (0x10), region = 177 }
 0x835   :  { %1541 = vsyncpa [#allocation4], 1 }
 0x836   :  { %1543 = vsyncpa [#allocation4 + $0x1], 1 }
 0x837   :  { %1544 = vsyncpa [#allocation7], 1 }
 0x838   :  { %1545 = vsyncpa [#allocation5], 1 }
 0x839   :  { %1547 = vsyncpa [#allocation5 + $0x1], 1 }

</bundles_post_ra>
